<compile_context>
chip_gen: v7x
topology: tpu7x:2x2x1
jax: 0.10.0
libtpu: 0.0.40
codegen_flags: <defaults>
</compile_context>

<pallas_src>
import math
import functools

import numpy as np
import jax
import jax.numpy as jnp
from jax import lax
from jax.experimental import pallas as pl
from jax.experimental.pallas import tpu as pltpu


_SCAN_CHUNK = 16      # timesteps per fori_loop iteration (unrolled inside)
_CARRY_ROWS = 8       # aligned (one f32 sublane group) conv left-context carry
_NT_DIMS = (((1,), (1,)), ((), ()))   # a @ b.T : contract dim 1 of both


def _selective_ssm_kernel(
    # inputs ---------------------------------------------------------------
    x_ref,        # (l_tile, D)  f32  raw input rows for this (batch, L tile)
    wconv_ref,    # (K, D)       f32  depthwise conv taps (tap k, channel d)
    bconv_ref,    # (1, D)       f32  conv bias
    wxdt_ref,     # (D, R)       f32  dt columns of x_proj (transposed)
    wdt_ref,      # (R, D)       f32  dt_proj weight (transposed)
    bdt_ref,      # (1, D)       f32  dt_proj bias
    wbc_ref,      # (2N, D)      mm   B|C rows of x_proj (original row layout)
    negA_ref,     # (N, D)       f32  -exp(A_log)^T
    wout_ref,     # (D, D)       mm   out_proj weight (transposed)
    # outputs ---------------------------------------------------------------
    o_ref,        # (l_tile, D)  f32
    # scratch ---------------------------------------------------------------
    dt_s,         # VMEM (l_tile, D) f32    softplus(dt_proj(dt_low))
    dtu_s,        # VMEM (l_tile, D) f32    dt * u
    bc3_s,        # VMEM (n_chunks, 2N, CHUNK) f32  time-transposed B|C chunks
    y_s,          # VMEM (l_tile, D) mm     scan output (pre out_proj)
    state_s,      # VMEM (N, D) f32         scan state, persists across L tiles
    carry_s,      # VMEM (8, D) f32         last 8 raw-x rows of previous tile
    *, d_tile,
):
    l_tile, d_model = o_ref.shape
    K = wconv_ref.shape[0]
    N = negA_ref.shape[0]
    n_chunks = bc3_s.shape[0]
    chunk = bc3_s.shape[2]
    mm_dtype = wout_ref.dtype
    lt_idx = pl.program_id(1)

    # ---- reset per-sequence carries on the first L tile of each batch -----
    @pl.when(lt_idx == 0)
    def _():
        state_s[...] = jnp.zeros_like(state_s)
        carry_s[...] = jnp.zeros_like(carry_s)

    # ---- depthwise causal conv1d (padding = K-1) + SiLU --------------------
    x_t = x_ref[...]                                          # (l_tile, D) f32
    # aligned concat: 8 carried rows (only the last K-1 are ever used) + tile
    x_full = jnp.concatenate([carry_s[...], x_t], axis=0)     # (l_tile+8, D)
    carry_s[...] = x_t[l_tile - _CARRY_ROWS:, :]              # context -> next tile
    off0 = _CARRY_ROWS - (K - 1)
    conv = jnp.zeros((l_tile, d_model), jnp.float32) + bconv_ref[...]
    w_taps = wconv_ref[...]
    for k in range(K):   # K shifted MACs (pltpu.roll variant possible; minor)
        conv = conv + x_full[off0 + k:off0 + k + l_tile, :] * w_taps[k:k + 1, :]
    x_conv = conv * jax.nn.sigmoid(conv)                      # SiLU, (l_tile, D)

    # ---- dt path (kept f32: feeds softplus -> exp, numerically sensitive) --
    dt_low = jnp.dot(x_conv, wxdt_ref[...],
                     preferred_element_type=jnp.float32)      # (l_tile, R)
    dt = jax.nn.softplus(
        jnp.dot(dt_low, wdt_ref[...], preferred_element_type=jnp.float32)
        + bdt_ref[...])                                       # (l_tile, D)
    dt_s[...] = dt
    dtu_s[...] = dt * x_conv

    # ---- selective B|C, produced time-major transposed (2N, l_tile) --------
    # one "NT" MXU matmul => no per-step lane->sublane relayout in the scan.
    bc_T = lax.dot_general(wbc_ref[...], x_conv.astype(mm_dtype),
                           dimension_numbers=_NT_DIMS,
                           preferred_element_type=jnp.float32)  # (2N, l_tile)
    for c in range(n_chunks):                                  # chunk-major staging
        bc3_s[c] = bc_T[:, c * chunk:(c + 1) * chunk]

    # ---- selective scan, blocked over D so the (N, d_tile) state stays in
    #      vregs for the whole tile; time runs in `chunk`-step unrolled chunks.
    num_d_tiles = d_model // d_tile
    for di in range(num_d_tiles):
        d0 = di * d_tile
        negA_d = negA_ref[:, d0:d0 + d_tile]                   # (N, d_tile)

        def chunk_body(c, state):
            base = pl.multiple_of(c * chunk, chunk)
            dt_c = dt_s[pl.ds(base, chunk), d0:d0 + d_tile]    # (chunk, d_tile)
            dtu_c = dtu_s[pl.ds(base, chunk), d0:d0 + d_tile]  # (chunk, d_tile)
            bc_c = bc3_s[c]                                    # (2N, chunk)
            b_c = bc_c[:N, :]
            c_c = bc_c[N:, :]
            rows = []
            for j in range(chunk):                             # unrolled steps
                a_t = jnp.exp(dt_c[j:j + 1, :] * negA_d)       # (N, d_tile)
                state = a_t * state + b_c[:, j:j + 1] * dtu_c[j:j + 1, :]
                rows.append(jnp.sum(c_c[:, j:j + 1] * state,
                                    axis=0, keepdims=True))    # (1, d_tile)
            # dense chunk store (sublane-group aligned, lane-dense per d_tile)
            y_s[pl.ds(base, chunk), d0:d0 + d_tile] = (
                jnp.concatenate(rows, axis=0).astype(y_s.dtype))
            return state

        state_out = lax.fori_loop(0, n_chunks, chunk_body,
                                  state_s[:, d0:d0 + d_tile])
        state_s[:, d0:d0 + d_tile] = state_out                 # carry to next L tile

    # ---- out_proj: one (l_tile, D) @ (D, D) matmul, dense output store -----
    o_ref[...] = jnp.dot(y_s[...], wout_ref[...],
                         preferred_element_type=jnp.float32).astype(o_ref.dtype)


def selective_ssm_forward(x, params, cfg, *, matmul_dtype=jnp.bfloat16,
                          l_tile=None, d_tile=None):
    """Pallas SelectiveSSM forward.

    matmul_dtype: operand dtype for the B|C projection / out_proj matmuls and
    the y staging buffer (f32 accumulation everywhere).  The dt path and the
    scan itself always run in f32.
    """
    B, L, D = x.shape
    N, R, K = cfg["d_state"], cfg["dt_rank"], cfg["d_conv"]
    assert 2 <= K <= _CARRY_ROWS + 1, "d_conv must be in [2, 9]"

    if l_tile is None:
        if L <= 256:
            l_tile = L
        elif L % 256 == 0:
            l_tile = 256
        elif L % 128 == 0:
            l_tile = 128
        else:
            l_tile = L
    if d_tile is None:
        if D <= 512:
            d_tile = D
        elif D % 256 == 0:
            d_tile = 256
        elif D % 128 == 0:
            d_tile = 128
        else:
            d_tile = D
    assert L % l_tile == 0, "seq_len must be a multiple of the L tile"
    assert l_tile % _SCAN_CHUNK == 0, "L tile must be a multiple of the scan chunk"
    assert D % d_tile == 0, "d_model must be a multiple of the D tile"
    n_l_tiles = L // l_tile
    n_chunks = l_tile // _SCAN_CHUNK

    # ---- host-side weight re-layouts (done once, tiny) ---------------------
    wconv = jnp.transpose(params["conv_w"][:, 0, :], (1, 0))              # (K, D)
    bconv = params["conv_b"][None, :]                                     # (1, D)
    wxdt = jnp.transpose(params["x_proj_w"][:R, :])                       # (D, R) f32
    wbc = params["x_proj_w"][R:, :].astype(matmul_dtype)                  # (2N, D)
    wdt_T = jnp.transpose(params["dt_proj_w"])                            # (R, D) f32
    bdt = params["dt_proj_b"][None, :]                                    # (1, D)
    negA_T = -jnp.exp(jnp.transpose(params["A_log"]))                     # (N, D)
    wout_T = jnp.transpose(params["out_proj_w"]).astype(matmul_dtype)     # (D, D)

    # ---- VMEM budget: double-buffered blocks + scratch + headroom ----------
    f32b = 4
    mmb = jnp.dtype(matmul_dtype).itemsize
    block_bytes = (
        2 * l_tile * D * f32b                                   # x blocks
        + 2 * l_tile * D * f32b                                 # out blocks
        + 2 * (K * D + D + D * R + R * D + D + N * D) * f32b    # f32 weights
        + 2 * (2 * N * D + D * D) * mmb)                        # mm weights
    scratch_bytes = (
        2 * l_tile * D * f32b                                   # dt, dt*u
        + n_chunks * 2 * N * _SCAN_CHUNK * f32b                 # bc chunks
        + l_tile * D * mmb                                      # y
        + (N * D + _CARRY_ROWS * D) * f32b)                     # state, carry
    vmem_limit = int(min(max(block_bytes + scratch_bytes + (4 << 20), 16 << 20),
                         100 << 20))

    grid_spec = pltpu.PrefetchScalarGridSpec(
        num_scalar_prefetch=0,
        grid=(B, n_l_tiles),
        in_specs=[
            pl.BlockSpec((None, l_tile, D), lambda b, lt: (b, lt, 0)),
            pl.BlockSpec((K, D), lambda b, lt: (0, 0)),
            pl.BlockSpec((1, D), lambda b, lt: (0, 0)),
            pl.BlockSpec((D, R), lambda b, lt: (0, 0)),
            pl.BlockSpec((R, D), lambda b, lt: (0, 0)),
            pl.BlockSpec((1, D), lambda b, lt: (0, 0)),
            pl.BlockSpec((2 * N, D), lambda b, lt: (0, 0)),
            pl.BlockSpec((N, D), lambda b, lt: (0, 0)),
            pl.BlockSpec((D, D), lambda b, lt: (0, 0)),
        ],
        out_specs=pl.BlockSpec((None, l_tile, D), lambda b, lt: (b, lt, 0)),
        scratch_shapes=[
            pltpu.VMEM((l_tile, D), jnp.float32),                       # dt
            pltpu.VMEM((l_tile, D), jnp.float32),                       # dt * u
            pltpu.VMEM((n_chunks, 2 * N, _SCAN_CHUNK), jnp.float32),    # B|C (T)
            pltpu.VMEM((l_tile, D), matmul_dtype),                      # y
            pltpu.VMEM((N, D), jnp.float32),                            # scan state
            pltpu.VMEM((_CARRY_ROWS, D), jnp.float32),                  # conv carry
        ],
    )

    kernel = functools.partial(_selective_ssm_kernel, d_tile=d_tile)
    return pl.pallas_call(
        kernel,
        out_shape=jax.ShapeDtypeStruct((B, L, D), jnp.float32),
        grid_spec=grid_spec,
        compiler_params=pltpu.CompilerParams(
            dimension_semantics=("parallel", "arbitrary"),
            vmem_limit_bytes=vmem_limit),
    )(x, wconv, bconv, wxdt, wdt_T, bdt, wbc, negA_T, wout_T)


def reference_forward(x, p, cfg):
    """Pure-JAX f32 reference matching the PyTorch module semantics."""
    B, L, D = x.shape
    K, R, N = cfg["d_conv"], cfg["dt_rank"], cfg["d_state"]
    x_pad = jnp.pad(x, ((0, 0), (K - 1, 0), (0, 0)))
    conv = jnp.zeros((B, L, D)) + p["conv_b"][None, None, :]
    for k in range(K):
        conv = conv + x_pad[:, k:k + L, :] * p["conv_w"][:, 0, k][None, None, :]
    xc = conv * jax.nn.sigmoid(conv)
    x_dbl = jnp.einsum("bld,ed->ble", xc, p["x_proj_w"])
    dt_low, Bm, Cm = x_dbl[..., :R], x_dbl[..., R:R + N], x_dbl[..., R + N:]
    dt = jax.nn.softplus(
        jnp.einsum("blr,dr->bld", dt_low, p["dt_proj_w"]) + p["dt_proj_b"])
    A = -jnp.exp(p["A_log"])                                   # (D, N)
    state = jnp.zeros((B, D, N))
    ys = []
    for t in range(L):
        a_t = jnp.exp(dt[:, t, :, None] * A[None, :, :])
        b_t = (dt[:, t, :] * xc[:, t, :])[:, :, None] * Bm[:, t, None, :]
        state = a_t * state + b_t
        ys.append(jnp.sum(Cm[:, t, None, :] * state, axis=-1))
    y = jnp.stack(ys, axis=1)
    return jnp.einsum("bld,ed->ble", y, p["out_proj_w"])


if __name__ == "__main__":
    batch, seq_len = 2, 16
    cfg = dict(d_model=32, d_state=8, dt_rank=8, d_conv=4)
    D, N, R, K = cfg["d_model"], cfg["d_state"], cfg["dt_rank"], cfg["d_conv"]

    key = jax.random.PRNGKey(0)
    ks = jax.random.split(key, 7)
    uni = lambda k, shape, s: jax.random.uniform(k, shape, jnp.float32, -s, s)
    params = {
        # A_log.data = log(arange(1, N+1)) repeated over d_model (as in __init__)
        "A_log": jnp.log(jnp.tile(jnp.arange(1, N + 1, dtype=jnp.float32), (D, 1))),
        "x_proj_w": uni(ks[0], (R + 2 * N, D), 1.0 / math.sqrt(D)),
        "dt_proj_w": uni(ks[1], (D, R), R ** (-0.5)),
        "dt_proj_b": uni(ks[2], (D,), 1.0 / math.sqrt(R)),
        "conv_w": uni(ks[3], (D, 1, K), 1.0 / math.sqrt(K)),
        "conv_b": uni(ks[4], (D,), 1.0 / math.sqrt(K)),
        "out_proj_w": uni(ks[5], (D, D), 1.0 / math.sqrt(D)),
    }
    x = jax.random.normal(ks[6], (batch, seq_len, D), jnp.float32)

    ref = reference_forward(x, params, cfg)

    # default configuration (bf16 matmul operands, f32 scan / dt path)
    out_bf16 = jax.block_until_ready(selective_ssm_forward(x, params, cfg))
    assert out_bf16.shape == (batch, seq_len, D)
    if not np.allclose(np.asarray(out_bf16), np.asarray(ref), rtol=5e-2, atol=5e-2):
        raise AssertionError(
            "bf16 kernel mismatch: max abs diff %e"
            % float(np.max(np.abs(np.asarray(out_bf16) - np.asarray(ref)))))

    # strict f32 correctness check
    out_f32 = jax.block_until_ready(
        selective_ssm_forward(x, params, cfg, matmul_dtype=jnp.float32))
    if not np.allclose(np.asarray(out_f32), np.asarray(ref), rtol=2e-2, atol=2e-2):
        raise AssertionError(
            "f32 kernel mismatch: max abs diff %e"
            % float(np.max(np.abs(np.asarray(out_f32) - np.asarray(ref)))))

    print("KERNEL_OK")
</pallas_src>

<mosaic_0001>
module attributes {stable_mosaic.version = 11 : i64} {
  func.func @_selective_ssm_kernel(%arg0: i32, %arg1: i32, %arg2: memref<1x16x32xf32, #tpu.memory_space<vmem>>, %arg3: memref<4x32xf32, #tpu.memory_space<vmem>>, %arg4: memref<1x32xf32, #tpu.memory_space<vmem>>, %arg5: memref<32x8xf32, #tpu.memory_space<vmem>>, %arg6: memref<8x32xf32, #tpu.memory_space<vmem>>, %arg7: memref<1x32xf32, #tpu.memory_space<vmem>>, %arg8: memref<16x32xbf16, #tpu.memory_space<vmem>>, %arg9: memref<8x32xf32, #tpu.memory_space<vmem>>, %arg10: memref<32x32xbf16, #tpu.memory_space<vmem>>, %arg11: memref<1x16x32xf32, #tpu.memory_space<vmem>>, %arg12: memref<16x32xf32, #tpu.memory_space<vmem>>, %arg13: memref<16x32xf32, #tpu.memory_space<vmem>>, %arg14: memref<1x16x16xf32, #tpu.memory_space<vmem>>, %arg15: memref<16x32xbf16, #tpu.memory_space<vmem>>, %arg16: memref<8x32xf32, #tpu.memory_space<vmem>>, %arg17: memref<8x32xf32, #tpu.memory_space<vmem>>) attributes {dimension_semantics = [#tpu.dimension_semantics<parallel>, #tpu.dimension_semantics<arbitrary>], iteration_bounds = array<i64: 2, 1>, scalar_prefetch = 0 : i64, scratch_operands = 6 : i64, tpu.core_type = #tpu.core_type<tc>, window_params = [{transform_indices = @transform_0, window_bounds = array<i64: 1, 16, 32>}, {pipeline_mode = #tpu.pipeline_mode<synchronous>, transform_indices = @transform_1, window_bounds = array<i64: 4, 32>}, {pipeline_mode = #tpu.pipeline_mode<synchronous>, transform_indices = @transform_2, window_bounds = array<i64: 1, 32>}, {pipeline_mode = #tpu.pipeline_mode<synchronous>, transform_indices = @transform_3, window_bounds = array<i64: 32, 8>}, {pipeline_mode = #tpu.pipeline_mode<synchronous>, transform_indices = @transform_4, window_bounds = array<i64: 8, 32>}, {pipeline_mode = #tpu.pipeline_mode<synchronous>, transform_indices = @transform_5, window_bounds = array<i64: 1, 32>}, {pipeline_mode = #tpu.pipeline_mode<synchronous>, transform_indices = @transform_6, window_bounds = array<i64: 16, 32>}, {pipeline_mode = #tpu.pipeline_mode<synchronous>, transform_indices = @transform_7, window_bounds = array<i64: 8, 32>}, {pipeline_mode = #tpu.pipeline_mode<synchronous>, transform_indices = @transform_8, window_bounds = array<i64: 32, 32>}, {transform_indices = @transform_9, window_bounds = array<i64: 1, 16, 32>}]} {
    %c0_i32 = arith.constant 0 : i32
    %0 = arith.cmpi eq, %arg1, %c0_i32 : i32
    %1 = arith.extui %0 : i1 to i32
    %c0_i32_0 = arith.constant 0 : i32
    %2 = arith.cmpi ne, %1, %c0_i32_0 : i32
    scf.if %2 {
      %cst_68 = arith.constant 0.000000e+00 : f32
      %350 = vector.broadcast %cst_68 : f32 to vector<8x32xf32>
      %c0_69 = arith.constant 0 : index
      %c0_70 = arith.constant 0 : index
      %351 = vector.load %arg16[%c0_69, %c0_70] : memref<8x32xf32, #tpu.memory_space<vmem>>, vector<8x32xf32>
      tpu.vector_store %arg16[%c0_69, %c0_70], %350 {strides = array<i32>} : memref<8x32xf32, #tpu.memory_space<vmem>>, vector<8x32xf32>,
      %cst_71 = arith.constant 0.000000e+00 : f32
      %352 = vector.broadcast %cst_71 : f32 to vector<8x32xf32>
      %c0_72 = arith.constant 0 : index
      %c0_73 = arith.constant 0 : index
      %353 = vector.load %arg17[%c0_72, %c0_73] : memref<8x32xf32, #tpu.memory_space<vmem>>, vector<8x32xf32>
      tpu.vector_store %arg17[%c0_72, %c0_73], %352 {strides = array<i32>} : memref<8x32xf32, #tpu.memory_space<vmem>>, vector<8x32xf32>,
    } else {
    }
    %c0 = arith.constant 0 : index
    %c0_1 = arith.constant 0 : index
    %c0_2 = arith.constant 0 : index
    %3 = vector.load %arg2[%c0, %c0_1, %c0_2] : memref<1x16x32xf32, #tpu.memory_space<vmem>>, vector<1x16x32xf32>
    %4 = vector.shape_cast %3 : vector<1x16x32xf32> to vector<16x32xf32>
    %c0_3 = arith.constant 0 : index
    %c0_4 = arith.constant 0 : index
    %5 = vector.load %arg17[%c0_3, %c0_4] : memref<8x32xf32, #tpu.memory_space<vmem>>, vector<8x32xf32>
    %6 = tpu.concatenate %5, %4 in 0 : vector<8x32xf32>, vector<16x32xf32> -> vector<24x32xf32>
    %7 = vector.extract_strided_slice %4 {offsets = [8, 0], sizes = [8, 32], strides = [1, 1]} : vector<16x32xf32> to vector<8x32xf32>
    %c0_5 = arith.constant 0 : index
    %c0_6 = arith.constant 0 : index
    %8 = vector.load %arg17[%c0_5, %c0_6] : memref<8x32xf32, #tpu.memory_space<vmem>>, vector<8x32xf32>
    tpu.vector_store %arg17[%c0_5, %c0_6], %7 {strides = array<i32>} : memref<8x32xf32, #tpu.memory_space<vmem>>, vector<8x32xf32>,
    %cst = arith.constant 0.000000e+00 : f32
    %9 = vector.broadcast %cst : f32 to vector<16x32xf32>
    %c0_7 = arith.constant 0 : index
    %c0_8 = arith.constant 0 : index
    %10 = vector.load %arg4[%c0_7, %c0_8] : memref<1x32xf32, #tpu.memory_space<vmem>>, vector<1x32xf32>
    %11 = vector.broadcast %10 : vector<1x32xf32> to vector<16x32xf32>
    %12 = arith.addf %9, %11 : vector<16x32xf32>
    %c0_9 = arith.constant 0 : index
    %c0_10 = arith.constant 0 : index
    %13 = vector.load %arg3[%c0_9, %c0_10] : memref<4x32xf32, #tpu.memory_space<vmem>>, vector<4x32xf32>
    %14 = vector.extract_strided_slice %6 {offsets = [5, 0], sizes = [16, 32], strides = [1, 1]} : vector<24x32xf32> to vector<16x32xf32>
    %15 = vector.extract_strided_slice %13 {offsets = [0, 0], sizes = [1, 32], strides = [1, 1]} : vector<4x32xf32> to vector<1x32xf32>
    %16 = vector.broadcast %15 : vector<1x32xf32> to vector<16x32xf32>
    %17 = arith.mulf %14, %16 : vector<16x32xf32>
    %18 = arith.addf %12, %17 : vector<16x32xf32>
    %19 = vector.extract_strided_slice %6 {offsets = [6, 0], sizes = [16, 32], strides = [1, 1]} : vector<24x32xf32> to vector<16x32xf32>
    %20 = vector.extract_strided_slice %13 {offsets = [1, 0], sizes = [1, 32], strides = [1, 1]} : vector<4x32xf32> to vector<1x32xf32>
    %21 = vector.broadcast %20 : vector<1x32xf32> to vector<16x32xf32>
    %22 = arith.mulf %19, %21 : vector<16x32xf32>
    %23 = arith.addf %18, %22 : vector<16x32xf32>
    %24 = vector.extract_strided_slice %6 {offsets = [7, 0], sizes = [16, 32], strides = [1, 1]} : vector<24x32xf32> to vector<16x32xf32>
    %25 = vector.extract_strided_slice %13 {offsets = [2, 0], sizes = [1, 32], strides = [1, 1]} : vector<4x32xf32> to vector<1x32xf32>
    %26 = vector.broadcast %25 : vector<1x32xf32> to vector<16x32xf32>
    %27 = arith.mulf %24, %26 : vector<16x32xf32>
    %28 = arith.addf %23, %27 : vector<16x32xf32>
    %29 = vector.extract_strided_slice %6 {offsets = [8, 0], sizes = [16, 32], strides = [1, 1]} : vector<24x32xf32> to vector<16x32xf32>
    %30 = vector.extract_strided_slice %13 {offsets = [3, 0], sizes = [1, 32], strides = [1, 1]} : vector<4x32xf32> to vector<1x32xf32>
    %31 = vector.broadcast %30 : vector<1x32xf32> to vector<16x32xf32>
    %32 = arith.mulf %29, %31 : vector<16x32xf32>
    %33 = arith.addf %28, %32 : vector<16x32xf32>
    %34 = arith.negf %33 : vector<16x32xf32>
    %35 = math.exp %34 : vector<16x32xf32>
    %cst_11 = arith.constant 1.000000e+00 : f32
    %36 = vector.broadcast %cst_11 : f32 to vector<16x32xf32>
    %37 = arith.addf %36, %35 : vector<16x32xf32>
    %38 = arith.divf %36, %37 : vector<16x32xf32>
    %39 = arith.mulf %33, %38 : vector<16x32xf32>
    %c0_12 = arith.constant 0 : index
    %c0_13 = arith.constant 0 : index
    %40 = vector.load %arg5[%c0_12, %c0_13] : memref<32x8xf32, #tpu.memory_space<vmem>>, vector<32x8xf32>
    %cst_14 = arith.constant dense<0.000000e+00> : vector<16x8xf32>
    %41 = tpu.matmul %39, %40, %cst_14 {dimension_numbers = #tpu.dot_dimension_numbers<[1], [0], [0], [1], [0, 0, 1, 1], [], []>} : vector<16x32xf32>, vector<32x8xf32>, vector<16x8xf32> -> vector<16x8xf32>
    %c0_15 = arith.constant 0 : index
    %c0_16 = arith.constant 0 : index
    %42 = vector.load %arg6[%c0_15, %c0_16] : memref<8x32xf32, #tpu.memory_space<vmem>>, vector<8x32xf32>
    %cst_17 = arith.constant dense<0.000000e+00> : vector<16x32xf32>
    %43 = tpu.matmul %41, %42, %cst_17 {dimension_numbers = #tpu.dot_dimension_numbers<[1], [0], [0], [1], [0, 0, 1, 1], [], []>} : vector<16x8xf32>, vector<8x32xf32>, vector<16x32xf32> -> vector<16x32xf32>
    %c0_18 = arith.constant 0 : index
    %c0_19 = arith.constant 0 : index
    %44 = vector.load %arg7[%c0_18, %c0_19] : memref<1x32xf32, #tpu.memory_space<vmem>>, vector<1x32xf32>
    %45 = vector.broadcast %44 : vector<1x32xf32> to vector<16x32xf32>
    %46 = arith.addf %43, %45 : vector<16x32xf32>
    %cst_20 = arith.constant 0.000000e+00 : f32
    %47 = vector.broadcast %cst_20 : f32 to vector<16x32xf32>
    %48 = arith.maximumf %46, %47 : vector<16x32xf32>
    %49 = vector.broadcast %cst_20 : f32 to vector<16x32xf32>
    %50 = arith.subf %46, %49 : vector<16x32xf32>
    %51 = arith.cmpf one, %50, %50 : vector<16x32xf32>
    %52 = vector.broadcast %cst_20 : f32 to vector<16x32xf32>
    %53 = arith.addf %46, %52 : vector<16x32xf32>
    %54 = math.absf %50 : vector<16x32xf32>
    %cst_21 = arith.constant 0.000000e+00 : f32
    %55 = vector.broadcast %cst_21 : f32 to vector<16x32xf32>
    %56 = arith.subf %55, %54 : vector<16x32xf32>
    %57 = math.exp %56 : vector<16x32xf32>
    %58 = math.log1p %57 : vector<16x32xf32>
    %59 = arith.addf %48, %58 : vector<16x32xf32>
    %60 = arith.select %51, %53, %59 : vector<16x32xi1>, vector<16x32xf32>
    %c0_22 = arith.constant 0 : index
    %c0_23 = arith.constant 0 : index
    %61 = vector.load %arg12[%c0_22, %c0_23] : memref<16x32xf32, #tpu.memory_space<vmem>>, vector<16x32xf32>
    tpu.vector_store %arg12[%c0_22, %c0_23], %60 {strides = array<i32>} : memref<16x32xf32, #tpu.memory_space<vmem>>, vector<16x32xf32>,
    %62 = arith.mulf %60, %39 : vector<16x32xf32>
    %c0_24 = arith.constant 0 : index
    %c0_25 = arith.constant 0 : index
    %63 = vector.load %arg13[%c0_24, %c0_25] : memref<16x32xf32, #tpu.memory_space<vmem>>, vector<16x32xf32>
    tpu.vector_store %arg13[%c0_24, %c0_25], %62 {strides = array<i32>} : memref<16x32xf32, #tpu.memory_space<vmem>>, vector<16x32xf32>,
    %c0_26 = arith.constant 0 : index
    %c0_27 = arith.constant 0 : index
    %64 = vector.load %arg8[%c0_26, %c0_27] : memref<16x32xbf16, #tpu.memory_space<vmem>>, vector<16x32xbf16>
    %65 = arith.truncf %39 : vector<16x32xf32> to vector<16x32xbf16>
    %cst_28 = arith.constant dense<0.000000e+00> : vector<16x16xf32>
    %66 = tpu.matmul %64, %65, %cst_28 {dimension_numbers = #tpu.dot_dimension_numbers<[1], [1], [0], [0], [0, 0, 1, 0], [], []>} : vector<16x32xbf16>, vector<16x32xbf16>, vector<16x16xf32> -> vector<16x16xf32>
    %c0_29 = arith.constant 0 : index
    %c0_30 = arith.constant 0 : index
    %c0_31 = arith.constant 0 : index
    %67 = vector.load %arg14[%c0_29, %c0_30, %c0_31] : memref<1x16x16xf32, #tpu.memory_space<vmem>>, vector<1x16x16xf32>
    %68 = vector.shape_cast %67 : vector<1x16x16xf32> to vector<16x16xf32>
    %69 = vector.shape_cast %66 : vector<16x16xf32> to vector<1x16x16xf32>
    tpu.vector_store %arg14[%c0_29, %c0_30, %c0_31], %69 {strides = array<i32>} : memref<1x16x16xf32, #tpu.memory_space<vmem>>, vector<1x16x16xf32>,
    %c0_32 = arith.constant 0 : index
    %c0_33 = arith.constant 0 : index
    %70 = vector.load %arg9[%c0_32, %c0_33] : memref<8x32xf32, #tpu.memory_space<vmem>>, vector<8x32xf32>
    %c0_34 = arith.constant 0 : index
    %c0_35 = arith.constant 0 : index
    %71 = vector.load %arg16[%c0_34, %c0_35] : memref<8x32xf32, #tpu.memory_space<vmem>>, vector<8x32xf32>
    %c0_i32_36 = arith.constant 0 : i32
    %c16_i32 = arith.constant 16 : i32
    %72 = arith.muli %c0_i32_36, %c16_i32 : i32
    %73 = tpu.assume_multiple %72, 16 : i32
    %74 = arith.index_cast %73 : i32 to index
    %c0_37 = arith.constant 0 : index
    %75 = vector.load %arg12[%74, %c0_37] : memref<16x32xf32, #tpu.memory_space<vmem>>, vector<16x32xf32>
    %76 = arith.index_cast %73 : i32 to index
    %c0_38 = arith.constant 0 : index
    %77 = vector.load %arg13[%76, %c0_38] : memref<16x32xf32, #tpu.memory_space<vmem>>, vector<16x32xf32>
    %78 = arith.index_cast %c0_i32_36 : i32 to index
    %c0_39 = arith.constant 0 : index
    %c0_40 = arith.constant 0 : index
    %79 = vector.load %arg14[%78, %c0_39, %c0_40] : memref<1x16x16xf32, #tpu.memory_space<vmem>>, vector<1x16x16xf32>
    %80 = vector.shape_cast %79 : vector<1x16x16xf32> to vector<16x16xf32>
    %81 = vector.extract_strided_slice %80 {offsets = [0, 0], sizes = [8, 16], strides = [1, 1]} : vector<16x16xf32> to vector<8x16xf32>
    %82 = vector.extract_strided_slice %80 {offsets = [8, 0], sizes = [8, 16], strides = [1, 1]} : vector<16x16xf32> to vector<8x16xf32>
    %83 = vector.extract_strided_slice %75 {offsets = [0, 0], sizes = [1, 32], strides = [1, 1]} : vector<16x32xf32> to vector<1x32xf32>
    %84 = vector.broadcast %83 : vector<1x32xf32> to vector<8x32xf32>
    %85 = arith.mulf %84, %70 : vector<8x32xf32>
    %86 = math.exp %85 : vector<8x32xf32>
    %87 = arith.mulf %86, %71 : vector<8x32xf32>
    %88 = vector.extract_strided_slice %81 {offsets = [0, 0], sizes = [8, 1], strides = [1, 1]} : vector<8x16xf32> to vector<8x1xf32>
    %89 = vector.extract_strided_slice %77 {offsets = [0, 0], sizes = [1, 32], strides = [1, 1]} : vector<16x32xf32> to vector<1x32xf32>
    %90 = vector.broadcast %88 : vector<8x1xf32> to vector<8x32xf32>
    %91 = vector.broadcast %89 : vector<1x32xf32> to vector<8x32xf32>
    %92 = arith.mulf %90, %91 : vector<8x32xf32>
    %93 = arith.addf %87, %92 : vector<8x32xf32>
    %94 = vector.extract_strided_slice %82 {offsets = [0, 0], sizes = [8, 1], strides = [1, 1]} : vector<8x16xf32> to vector<8x1xf32>
    %95 = vector.broadcast %94 : vector<8x1xf32> to vector<8x32xf32>
    %96 = arith.mulf %95, %93 : vector<8x32xf32>
    %cst_41 = arith.constant dense<0.000000e+00> : vector<32xf32>
    %97 = vector.multi_reduction <add>, %96, %cst_41 [0] : vector<8x32xf32> to vector<32xf32>
    %98 = vector.shape_cast %97 : vector<32xf32> to vector<1x32xf32>
    %99 = vector.extract_strided_slice %75 {offsets = [1, 0], sizes = [1, 32], strides = [1, 1]} : vector<16x32xf32> to vector<1x32xf32>
    %100 = vector.broadcast %99 : vector<1x32xf32> to vector<8x32xf32>
    %101 = arith.mulf %100, %70 : vector<8x32xf32>
    %102 = math.exp %101 : vector<8x32xf32>
    %103 = arith.mulf %102, %93 : vector<8x32xf32>
    %104 = vector.extract_strided_slice %81 {offsets = [0, 1], sizes = [8, 1], strides = [1, 1]} : vector<8x16xf32> to vector<8x1xf32>
    %105 = vector.extract_strided_slice %77 {offsets = [1, 0], sizes = [1, 32], strides = [1, 1]} : vector<16x32xf32> to vector<1x32xf32>
    %106 = vector.broadcast %104 : vector<8x1xf32> to vector<8x32xf32>
    %107 = vector.broadcast %105 : vector<1x32xf32> to vector<8x32xf32>
    %108 = arith.mulf %106, %107 : vector<8x32xf32>
    %109 = arith.addf %103, %108 : vector<8x32xf32>
    %110 = vector.extract_strided_slice %82 {offsets = [0, 1], sizes = [8, 1], strides = [1, 1]} : vector<8x16xf32> to vector<8x1xf32>
    %111 = vector.broadcast %110 : vector<8x1xf32> to vector<8x32xf32>
    %112 = arith.mulf %111, %109 : vector<8x32xf32>
    %cst_42 = arith.constant dense<0.000000e+00> : vector<32xf32>
    %113 = vector.multi_reduction <add>, %112, %cst_42 [0] : vector<8x32xf32> to vector<32xf32>
    %114 = vector.shape_cast %113 : vector<32xf32> to vector<1x32xf32>
    %115 = vector.extract_strided_slice %75 {offsets = [2, 0], sizes = [1, 32], strides = [1, 1]} : vector<16x32xf32> to vector<1x32xf32>
    %116 = vector.broadcast %115 : vector<1x32xf32> to vector<8x32xf32>
    %117 = arith.mulf %116, %70 : vector<8x32xf32>
    %118 = math.exp %117 : vector<8x32xf32>
    %119 = arith.mulf %118, %109 : vector<8x32xf32>
    %120 = vector.extract_strided_slice %81 {offsets = [0, 2], sizes = [8, 1], strides = [1, 1]} : vector<8x16xf32> to vector<8x1xf32>
    %121 = vector.extract_strided_slice %77 {offsets = [2, 0], sizes = [1, 32], strides = [1, 1]} : vector<16x32xf32> to vector<1x32xf32>
    %122 = vector.broadcast %120 : vector<8x1xf32> to vector<8x32xf32>
    %123 = vector.broadcast %121 : vector<1x32xf32> to vector<8x32xf32>
    %124 = arith.mulf %122, %123 : vector<8x32xf32>
    %125 = arith.addf %119, %124 : vector<8x32xf32>
    %126 = vector.extract_strided_slice %82 {offsets = [0, 2], sizes = [8, 1], strides = [1, 1]} : vector<8x16xf32> to vector<8x1xf32>
    %127 = vector.broadcast %126 : vector<8x1xf32> to vector<8x32xf32>
    %128 = arith.mulf %127, %125 : vector<8x32xf32>
    %cst_43 = arith.constant dense<0.000000e+00> : vector<32xf32>
    %129 = vector.multi_reduction <add>, %128, %cst_43 [0] : vector<8x32xf32> to vector<32xf32>
    %130 = vector.shape_cast %129 : vector<32xf32> to vector<1x32xf32>
    %131 = vector.extract_strided_slice %75 {offsets = [3, 0], sizes = [1, 32], strides = [1, 1]} : vector<16x32xf32> to vector<1x32xf32>
    %132 = vector.broadcast %131 : vector<1x32xf32> to vector<8x32xf32>
    %133 = arith.mulf %132, %70 : vector<8x32xf32>
    %134 = math.exp %133 : vector<8x32xf32>
    %135 = arith.mulf %134, %125 : vector<8x32xf32>
    %136 = vector.extract_strided_slice %81 {offsets = [0, 3], sizes = [8, 1], strides = [1, 1]} : vector<8x16xf32> to vector<8x1xf32>
    %137 = vector.extract_strided_slice %77 {offsets = [3, 0], sizes = [1, 32], strides = [1, 1]} : vector<16x32xf32> to vector<1x32xf32>
    %138 = vector.broadcast %136 : vector<8x1xf32> to vector<8x32xf32>
    %139 = vector.broadcast %137 : vector<1x32xf32> to vector<8x32xf32>
    %140 = arith.mulf %138, %139 : vector<8x32xf32>
    %141 = arith.addf %135, %140 : vector<8x32xf32>
    %142 = vector.extract_strided_slice %82 {offsets = [0, 3], sizes = [8, 1], strides = [1, 1]} : vector<8x16xf32> to vector<8x1xf32>
    %143 = vector.broadcast %142 : vector<8x1xf32> to vector<8x32xf32>
    %144 = arith.mulf %143, %141 : vector<8x32xf32>
    %cst_44 = arith.constant dense<0.000000e+00> : vector<32xf32>
    %145 = vector.multi_reduction <add>, %144, %cst_44 [0] : vector<8x32xf32> to vector<32xf32>
    %146 = vector.shape_cast %145 : vector<32xf32> to vector<1x32xf32>
    %147 = vector.extract_strided_slice %75 {offsets = [4, 0], sizes = [1, 32], strides = [1, 1]} : vector<16x32xf32> to vector<1x32xf32>
    %148 = vector.broadcast %147 : vector<1x32xf32> to vector<8x32xf32>
    %149 = arith.mulf %148, %70 : vector<8x32xf32>
    %150 = math.exp %149 : vector<8x32xf32>
    %151 = arith.mulf %150, %141 : vector<8x32xf32>
    %152 = vector.extract_strided_slice %81 {offsets = [0, 4], sizes = [8, 1], strides = [1, 1]} : vector<8x16xf32> to vector<8x1xf32>
    %153 = vector.extract_strided_slice %77 {offsets = [4, 0], sizes = [1, 32], strides = [1, 1]} : vector<16x32xf32> to vector<1x32xf32>
    %154 = vector.broadcast %152 : vector<8x1xf32> to vector<8x32xf32>
    %155 = vector.broadcast %153 : vector<1x32xf32> to vector<8x32xf32>
    %156 = arith.mulf %154, %155 : vector<8x32xf32>
    %157 = arith.addf %151, %156 : vector<8x32xf32>
    %158 = vector.extract_strided_slice %82 {offsets = [0, 4], sizes = [8, 1], strides = [1, 1]} : vector<8x16xf32> to vector<8x1xf32>
    %159 = vector.broadcast %158 : vector<8x1xf32> to vector<8x32xf32>
    %160 = arith.mulf %159, %157 : vector<8x32xf32>
    %cst_45 = arith.constant dense<0.000000e+00> : vector<32xf32>
    %161 = vector.multi_reduction <add>, %160, %cst_45 [0] : vector<8x32xf32> to vector<32xf32>
    %162 = vector.shape_cast %161 : vector<32xf32> to vector<1x32xf32>
    %163 = vector.extract_strided_slice %75 {offsets = [5, 0], sizes = [1, 32], strides = [1, 1]} : vector<16x32xf32> to vector<1x32xf32>
    %164 = vector.broadcast %163 : vector<1x32xf32> to vector<8x32xf32>
    %165 = arith.mulf %164, %70 : vector<8x32xf32>
    %166 = math.exp %165 : vector<8x32xf32>
    %167 = arith.mulf %166, %157 : vector<8x32xf32>
    %168 = vector.extract_strided_slice %81 {offsets = [0, 5], sizes = [8, 1], strides = [1, 1]} : vector<8x16xf32> to vector<8x1xf32>
    %169 = vector.extract_strided_slice %77 {offsets = [5, 0], sizes = [1, 32], strides = [1, 1]} : vector<16x32xf32> to vector<1x32xf32>
    %170 = vector.broadcast %168 : vector<8x1xf32> to vector<8x32xf32>
    %171 = vector.broadcast %169 : vector<1x32xf32> to vector<8x32xf32>
    %172 = arith.mulf %170, %171 : vector<8x32xf32>
    %173 = arith.addf %167, %172 : vector<8x32xf32>
    %174 = vector.extract_strided_slice %82 {offsets = [0, 5], sizes = [8, 1], strides = [1, 1]} : vector<8x16xf32> to vector<8x1xf32>
    %175 = vector.broadcast %174 : vector<8x1xf32> to vector<8x32xf32>
    %176 = arith.mulf %175, %173 : vector<8x32xf32>
    %cst_46 = arith.constant dense<0.000000e+00> : vector<32xf32>
    %177 = vector.multi_reduction <add>, %176, %cst_46 [0] : vector<8x32xf32> to vector<32xf32>
    %178 = vector.shape_cast %177 : vector<32xf32> to vector<1x32xf32>
    %179 = vector.extract_strided_slice %75 {offsets = [6, 0], sizes = [1, 32], strides = [1, 1]} : vector<16x32xf32> to vector<1x32xf32>
    %180 = vector.broadcast %179 : vector<1x32xf32> to vector<8x32xf32>
    %181 = arith.mulf %180, %70 : vector<8x32xf32>
    %182 = math.exp %181 : vector<8x32xf32>
    %183 = arith.mulf %182, %173 : vector<8x32xf32>
    %184 = vector.extract_strided_slice %81 {offsets = [0, 6], sizes = [8, 1], strides = [1, 1]} : vector<8x16xf32> to vector<8x1xf32>
    %185 = vector.extract_strided_slice %77 {offsets = [6, 0], sizes = [1, 32], strides = [1, 1]} : vector<16x32xf32> to vector<1x32xf32>
    %186 = vector.broadcast %184 : vector<8x1xf32> to vector<8x32xf32>
    %187 = vector.broadcast %185 : vector<1x32xf32> to vector<8x32xf32>
    %188 = arith.mulf %186, %187 : vector<8x32xf32>
    %189 = arith.addf %183, %188 : vector<8x32xf32>
    %190 = vector.extract_strided_slice %82 {offsets = [0, 6], sizes = [8, 1], strides = [1, 1]} : vector<8x16xf32> to vector<8x1xf32>
    %191 = vector.broadcast %190 : vector<8x1xf32> to vector<8x32xf32>
    %192 = arith.mulf %191, %189 : vector<8x32xf32>
    %cst_47 = arith.constant dense<0.000000e+00> : vector<32xf32>
    %193 = vector.multi_reduction <add>, %192, %cst_47 [0] : vector<8x32xf32> to vector<32xf32>
    %194 = vector.shape_cast %193 : vector<32xf32> to vector<1x32xf32>
    %195 = vector.extract_strided_slice %75 {offsets = [7, 0], sizes = [1, 32], strides = [1, 1]} : vector<16x32xf32> to vector<1x32xf32>
    %196 = vector.broadcast %195 : vector<1x32xf32> to vector<8x32xf32>
    %197 = arith.mulf %196, %70 : vector<8x32xf32>
    %198 = math.exp %197 : vector<8x32xf32>
    %199 = arith.mulf %198, %189 : vector<8x32xf32>
    %200 = vector.extract_strided_slice %81 {offsets = [0, 7], sizes = [8, 1], strides = [1, 1]} : vector<8x16xf32> to vector<8x1xf32>
    %201 = vector.extract_strided_slice %77 {offsets = [7, 0], sizes = [1, 32], strides = [1, 1]} : vector<16x32xf32> to vector<1x32xf32>
    %202 = vector.broadcast %200 : vector<8x1xf32> to vector<8x32xf32>
    %203 = vector.broadcast %201 : vector<1x32xf32> to vector<8x32xf32>
    %204 = arith.mulf %202, %203 : vector<8x32xf32>
    %205 = arith.addf %199, %204 : vector<8x32xf32>
    %206 = vector.extract_strided_slice %82 {offsets = [0, 7], sizes = [8, 1], strides = [1, 1]} : vector<8x16xf32> to vector<8x1xf32>
    %207 = vector.broadcast %206 : vector<8x1xf32> to vector<8x32xf32>
    %208 = arith.mulf %207, %205 : vector<8x32xf32>
    %cst_48 = arith.constant dense<0.000000e+00> : vector<32xf32>
    %209 = vector.multi_reduction <add>, %208, %cst_48 [0] : vector<8x32xf32> to vector<32xf32>
    %210 = vector.shape_cast %209 : vector<32xf32> to vector<1x32xf32>
    %211 = vector.extract_strided_slice %75 {offsets = [8, 0], sizes = [1, 32], strides = [1, 1]} : vector<16x32xf32> to vector<1x32xf32>
    %212 = vector.broadcast %211 : vector<1x32xf32> to vector<8x32xf32>
    %213 = arith.mulf %212, %70 : vector<8x32xf32>
    %214 = math.exp %213 : vector<8x32xf32>
    %215 = arith.mulf %214, %205 : vector<8x32xf32>
    %216 = vector.extract_strided_slice %81 {offsets = [0, 8], sizes = [8, 1], strides = [1, 1]} : vector<8x16xf32> to vector<8x1xf32>
    %217 = vector.extract_strided_slice %77 {offsets = [8, 0], sizes = [1, 32], strides = [1, 1]} : vector<16x32xf32> to vector<1x32xf32>
    %218 = vector.broadcast %216 : vector<8x1xf32> to vector<8x32xf32>
    %219 = vector.broadcast %217 : vector<1x32xf32> to vector<8x32xf32>
    %220 = arith.mulf %218, %219 : vector<8x32xf32>
    %221 = arith.addf %215, %220 : vector<8x32xf32>
    %222 = vector.extract_strided_slice %82 {offsets = [0, 8], sizes = [8, 1], strides = [1, 1]} : vector<8x16xf32> to vector<8x1xf32>
    %223 = vector.broadcast %222 : vector<8x1xf32> to vector<8x32xf32>
    %224 = arith.mulf %223, %221 : vector<8x32xf32>
    %cst_49 = arith.constant dense<0.000000e+00> : vector<32xf32>
    %225 = vector.multi_reduction <add>, %224, %cst_49 [0] : vector<8x32xf32> to vector<32xf32>
    %226 = vector.shape_cast %225 : vector<32xf32> to vector<1x32xf32>
    %227 = vector.extract_strided_slice %75 {offsets = [9, 0], sizes = [1, 32], strides = [1, 1]} : vector<16x32xf32> to vector<1x32xf32>
    %228 = vector.broadcast %227 : vector<1x32xf32> to vector<8x32xf32>
    %229 = arith.mulf %228, %70 : vector<8x32xf32>
    %230 = math.exp %229 : vector<8x32xf32>
    %231 = arith.mulf %230, %221 : vector<8x32xf32>
    %232 = vector.extract_strided_slice %81 {offsets = [0, 9], sizes = [8, 1], strides = [1, 1]} : vector<8x16xf32> to vector<8x1xf32>
    %233 = vector.extract_strided_slice %77 {offsets = [9, 0], sizes = [1, 32], strides = [1, 1]} : vector<16x32xf32> to vector<1x32xf32>
    %234 = vector.broadcast %232 : vector<8x1xf32> to vector<8x32xf32>
    %235 = vector.broadcast %233 : vector<1x32xf32> to vector<8x32xf32>
    %236 = arith.mulf %234, %235 : vector<8x32xf32>
    %237 = arith.addf %231, %236 : vector<8x32xf32>
    %238 = vector.extract_strided_slice %82 {offsets = [0, 9], sizes = [8, 1], strides = [1, 1]} : vector<8x16xf32> to vector<8x1xf32>
    %239 = vector.broadcast %238 : vector<8x1xf32> to vector<8x32xf32>
    %240 = arith.mulf %239, %237 : vector<8x32xf32>
    %cst_50 = arith.constant dense<0.000000e+00> : vector<32xf32>
    %241 = vector.multi_reduction <add>, %240, %cst_50 [0] : vector<8x32xf32> to vector<32xf32>
    %242 = vector.shape_cast %241 : vector<32xf32> to vector<1x32xf32>
    %243 = vector.extract_strided_slice %75 {offsets = [10, 0], sizes = [1, 32], strides = [1, 1]} : vector<16x32xf32> to vector<1x32xf32>
    %244 = vector.broadcast %243 : vector<1x32xf32> to vector<8x32xf32>
    %245 = arith.mulf %244, %70 : vector<8x32xf32>
    %246 = math.exp %245 : vector<8x32xf32>
    %247 = arith.mulf %246, %237 : vector<8x32xf32>
    %248 = vector.extract_strided_slice %81 {offsets = [0, 10], sizes = [8, 1], strides = [1, 1]} : vector<8x16xf32> to vector<8x1xf32>
    %249 = vector.extract_strided_slice %77 {offsets = [10, 0], sizes = [1, 32], strides = [1, 1]} : vector<16x32xf32> to vector<1x32xf32>
    %250 = vector.broadcast %248 : vector<8x1xf32> to vector<8x32xf32>
    %251 = vector.broadcast %249 : vector<1x32xf32> to vector<8x32xf32>
    %252 = arith.mulf %250, %251 : vector<8x32xf32>
    %253 = arith.addf %247, %252 : vector<8x32xf32>
    %254 = vector.extract_strided_slice %82 {offsets = [0, 10], sizes = [8, 1], strides = [1, 1]} : vector<8x16xf32> to vector<8x1xf32>
    %255 = vector.broadcast %254 : vector<8x1xf32> to vector<8x32xf32>
    %256 = arith.mulf %255, %253 : vector<8x32xf32>
    %cst_51 = arith.constant dense<0.000000e+00> : vector<32xf32>
    %257 = vector.multi_reduction <add>, %256, %cst_51 [0] : vector<8x32xf32> to vector<32xf32>
    %258 = vector.shape_cast %257 : vector<32xf32> to vector<1x32xf32>
    %259 = vector.extract_strided_slice %75 {offsets = [11, 0], sizes = [1, 32], strides = [1, 1]} : vector<16x32xf32> to vector<1x32xf32>
    %260 = vector.broadcast %259 : vector<1x32xf32> to vector<8x32xf32>
    %261 = arith.mulf %260, %70 : vector<8x32xf32>
    %262 = math.exp %261 : vector<8x32xf32>
    %263 = arith.mulf %262, %253 : vector<8x32xf32>
    %264 = vector.extract_strided_slice %81 {offsets = [0, 11], sizes = [8, 1], strides = [1, 1]} : vector<8x16xf32> to vector<8x1xf32>
    %265 = vector.extract_strided_slice %77 {offsets = [11, 0], sizes = [1, 32], strides = [1, 1]} : vector<16x32xf32> to vector<1x32xf32>
    %266 = vector.broadcast %264 : vector<8x1xf32> to vector<8x32xf32>
    %267 = vector.broadcast %265 : vector<1x32xf32> to vector<8x32xf32>
    %268 = arith.mulf %266, %267 : vector<8x32xf32>
    %269 = arith.addf %263, %268 : vector<8x32xf32>
    %270 = vector.extract_strided_slice %82 {offsets = [0, 11], sizes = [8, 1], strides = [1, 1]} : vector<8x16xf32> to vector<8x1xf32>
    %271 = vector.broadcast %270 : vector<8x1xf32> to vector<8x32xf32>
    %272 = arith.mulf %271, %269 : vector<8x32xf32>
    %cst_52 = arith.constant dense<0.000000e+00> : vector<32xf32>
    %273 = vector.multi_reduction <add>, %272, %cst_52 [0] : vector<8x32xf32> to vector<32xf32>
    %274 = vector.shape_cast %273 : vector<32xf32> to vector<1x32xf32>
    %275 = vector.extract_strided_slice %75 {offsets = [12, 0], sizes = [1, 32], strides = [1, 1]} : vector<16x32xf32> to vector<1x32xf32>
    %276 = vector.broadcast %275 : vector<1x32xf32> to vector<8x32xf32>
    %277 = arith.mulf %276, %70 : vector<8x32xf32>
    %278 = math.exp %277 : vector<8x32xf32>
    %279 = arith.mulf %278, %269 : vector<8x32xf32>
    %280 = vector.extract_strided_slice %81 {offsets = [0, 12], sizes = [8, 1], strides = [1, 1]} : vector<8x16xf32> to vector<8x1xf32>
    %281 = vector.extract_strided_slice %77 {offsets = [12, 0], sizes = [1, 32], strides = [1, 1]} : vector<16x32xf32> to vector<1x32xf32>
    %282 = vector.broadcast %280 : vector<8x1xf32> to vector<8x32xf32>
    %283 = vector.broadcast %281 : vector<1x32xf32> to vector<8x32xf32>
    %284 = arith.mulf %282, %283 : vector<8x32xf32>
    %285 = arith.addf %279, %284 : vector<8x32xf32>
    %286 = vector.extract_strided_slice %82 {offsets = [0, 12], sizes = [8, 1], strides = [1, 1]} : vector<8x16xf32> to vector<8x1xf32>
    %287 = vector.broadcast %286 : vector<8x1xf32> to vector<8x32xf32>
    %288 = arith.mulf %287, %285 : vector<8x32xf32>
    %cst_53 = arith.constant dense<0.000000e+00> : vector<32xf32>
    %289 = vector.multi_reduction <add>, %288, %cst_53 [0] : vector<8x32xf32> to vector<32xf32>
    %290 = vector.shape_cast %289 : vector<32xf32> to vector<1x32xf32>
    %291 = vector.extract_strided_slice %75 {offsets = [13, 0], sizes = [1, 32], strides = [1, 1]} : vector<16x32xf32> to vector<1x32xf32>
    %292 = vector.broadcast %291 : vector<1x32xf32> to vector<8x32xf32>
    %293 = arith.mulf %292, %70 : vector<8x32xf32>
    %294 = math.exp %293 : vector<8x32xf32>
    %295 = arith.mulf %294, %285 : vector<8x32xf32>
    %296 = vector.extract_strided_slice %81 {offsets = [0, 13], sizes = [8, 1], strides = [1, 1]} : vector<8x16xf32> to vector<8x1xf32>
    %297 = vector.extract_strided_slice %77 {offsets = [13, 0], sizes = [1, 32], strides = [1, 1]} : vector<16x32xf32> to vector<1x32xf32>
    %298 = vector.broadcast %296 : vector<8x1xf32> to vector<8x32xf32>
    %299 = vector.broadcast %297 : vector<1x32xf32> to vector<8x32xf32>
    %300 = arith.mulf %298, %299 : vector<8x32xf32>
    %301 = arith.addf %295, %300 : vector<8x32xf32>
    %302 = vector.extract_strided_slice %82 {offsets = [0, 13], sizes = [8, 1], strides = [1, 1]} : vector<8x16xf32> to vector<8x1xf32>
    %303 = vector.broadcast %302 : vector<8x1xf32> to vector<8x32xf32>
    %304 = arith.mulf %303, %301 : vector<8x32xf32>
    %cst_54 = arith.constant dense<0.000000e+00> : vector<32xf32>
    %305 = vector.multi_reduction <add>, %304, %cst_54 [0] : vector<8x32xf32> to vector<32xf32>
    %306 = vector.shape_cast %305 : vector<32xf32> to vector<1x32xf32>
    %307 = vector.extract_strided_slice %75 {offsets = [14, 0], sizes = [1, 32], strides = [1, 1]} : vector<16x32xf32> to vector<1x32xf32>
    %308 = vector.broadcast %307 : vector<1x32xf32> to vector<8x32xf32>
    %309 = arith.mulf %308, %70 : vector<8x32xf32>
    %310 = math.exp %309 : vector<8x32xf32>
    %311 = arith.mulf %310, %301 : vector<8x32xf32>
    %312 = vector.extract_strided_slice %81 {offsets = [0, 14], sizes = [8, 1], strides = [1, 1]} : vector<8x16xf32> to vector<8x1xf32>
    %313 = vector.extract_strided_slice %77 {offsets = [14, 0], sizes = [1, 32], strides = [1, 1]} : vector<16x32xf32> to vector<1x32xf32>
    %314 = vector.broadcast %312 : vector<8x1xf32> to vector<8x32xf32>
    %315 = vector.broadcast %313 : vector<1x32xf32> to vector<8x32xf32>
    %316 = arith.mulf %314, %315 : vector<8x32xf32>
    %317 = arith.addf %311, %316 : vector<8x32xf32>
    %318 = vector.extract_strided_slice %82 {offsets = [0, 14], sizes = [8, 1], strides = [1, 1]} : vector<8x16xf32> to vector<8x1xf32>
    %319 = vector.broadcast %318 : vector<8x1xf32> to vector<8x32xf32>
    %320 = arith.mulf %319, %317 : vector<8x32xf32>
    %cst_55 = arith.constant dense<0.000000e+00> : vector<32xf32>
    %321 = vector.multi_reduction <add>, %320, %cst_55 [0] : vector<8x32xf32> to vector<32xf32>
    %322 = vector.shape_cast %321 : vector<32xf32> to vector<1x32xf32>
    %323 = vector.extract_strided_slice %75 {offsets = [15, 0], sizes = [1, 32], strides = [1, 1]} : vector<16x32xf32> to vector<1x32xf32>
    %324 = vector.broadcast %323 : vector<1x32xf32> to vector<8x32xf32>
    %325 = arith.mulf %324, %70 : vector<8x32xf32>
    %326 = math.exp %325 : vector<8x32xf32>
    %327 = arith.mulf %326, %317 : vector<8x32xf32>
    %328 = vector.extract_strided_slice %81 {offsets = [0, 15], sizes = [8, 1], strides = [1, 1]} : vector<8x16xf32> to vector<8x1xf32>
    %329 = vector.extract_strided_slice %77 {offsets = [15, 0], sizes = [1, 32], strides = [1, 1]} : vector<16x32xf32> to vector<1x32xf32>
    %330 = vector.broadcast %328 : vector<8x1xf32> to vector<8x32xf32>
    %331 = vector.broadcast %329 : vector<1x32xf32> to vector<8x32xf32>
    %332 = arith.mulf %330, %331 : vector<8x32xf32>
    %333 = arith.addf %327, %332 : vector<8x32xf32>
    %334 = vector.extract_strided_slice %82 {offsets = [0, 15], sizes = [8, 1], strides = [1, 1]} : vector<8x16xf32> to vector<8x1xf32>
    %335 = vector.broadcast %334 : vector<8x1xf32> to vector<8x32xf32>
    %336 = arith.mulf %335, %333 : vector<8x32xf32>
    %cst_56 = arith.constant dense<0.000000e+00> : vector<32xf32>
    %337 = vector.multi_reduction <add>, %336, %cst_56 [0] : vector<8x32xf32> to vector<32xf32>
    %338 = vector.shape_cast %337 : vector<32xf32> to vector<1x32xf32>
    %339 = tpu.concatenate %98, %114, %130, %146, %162, %178, %194, %210, %226, %242, %258, %274, %290, %306, %322, %338 in 0 : vector<1x32xf32>, vector<1x32xf32>, vector<1x32xf32>, vector<1x32xf32>, vector<1x32xf32>, vector<1x32xf32>, vector<1x32xf32>, vector<1x32xf32>, vector<1x32xf32>, vector<1x32xf32>, vector<1x32xf32>, vector<1x32xf32>, vector<1x32xf32>, vector<1x32xf32>, vector<1x32xf32>, vector<1x32xf32> -> vector<16x32xf32>
    %340 = arith.truncf %339 : vector<16x32xf32> to vector<16x32xbf16>
    %341 = arith.index_cast %73 : i32 to index
    %c0_57 = arith.constant 0 : index
    %342 = vector.load %arg15[%341, %c0_57] : memref<16x32xbf16, #tpu.memory_space<vmem>>, vector<16x32xbf16>
    tpu.vector_store %arg15[%341, %c0_57], %340 {strides = array<i32>} : memref<16x32xbf16, #tpu.memory_space<vmem>>, vector<16x32xbf16>,
    %c1_i32 = arith.constant 1 : i32
    %c0_58 = arith.constant 0 : index
    %c0_59 = arith.constant 0 : index
    %343 = vector.load %arg16[%c0_58, %c0_59] : memref<8x32xf32, #tpu.memory_space<vmem>>, vector<8x32xf32>
    tpu.vector_store %arg16[%c0_58, %c0_59], %333 {strides = array<i32>} : memref<8x32xf32, #tpu.memory_space<vmem>>, vector<8x32xf32>,
    %c0_60 = arith.constant 0 : index
    %c0_61 = arith.constant 0 : index
    %344 = vector.load %arg15[%c0_60, %c0_61] : memref<16x32xbf16, #tpu.memory_space<vmem>>, vector<16x32xbf16>
    %c0_62 = arith.constant 0 : index
    %c0_63 = arith.constant 0 : index
    %345 = vector.load %arg10[%c0_62, %c0_63] : memref<32x32xbf16, #tpu.memory_space<vmem>>, vector<32x32xbf16>
    %cst_64 = arith.constant dense<0.000000e+00> : vector<16x32xf32>
    %346 = tpu.matmul %344, %345, %cst_64 {dimension_numbers = #tpu.dot_dimension_numbers<[1], [0], [0], [1], [0, 0, 1, 1], [], []>} : vector<16x32xbf16>, vector<32x32xbf16>, vector<16x32xf32> -> vector<16x32xf32>
    %c0_65 = arith.constant 0 : index
    %c0_66 = arith.constant 0 : index
    %c0_67 = arith.constant 0 : index
    %347 = vector.load %arg11[%c0_65, %c0_66, %c0_67] : memref<1x16x32xf32, #tpu.memory_space<vmem>>, vector<1x16x32xf32>
    %348 = vector.shape_cast %347 : vector<1x16x32xf32> to vector<16x32xf32>
    %349 = vector.shape_cast %346 : vector<16x32xf32> to vector<1x16x32xf32>
    tpu.vector_store %arg11[%c0_65, %c0_66, %c0_67], %349 {strides = array<i32>} : memref<1x16x32xf32, #tpu.memory_space<vmem>>, vector<1x16x32xf32>,
    return
  }
  func.func @transform_0(%arg0: i32, %arg1: i32) -> (i32, i32, i32) {
    %c0_i32 = arith.constant 0 : i32
    %c0_i32_0 = arith.constant 0 : i32
    return %arg0, %arg1, %c0_i32 : i32, i32, i32
  }
  func.func @transform_1(%arg0: i32, %arg1: i32) -> (i32, i32) {
    %c0_i32 = arith.constant 0 : i32
    %c0_i32_0 = arith.constant 0 : i32
    %c0_i32_1 = arith.constant 0 : i32
    return %c0_i32, %c0_i32_0 : i32, i32
  }
  func.func @transform_2(%arg0: i32, %arg1: i32) -> (i32, i32) {
    %c0_i32 = arith.constant 0 : i32
    %c0_i32_0 = arith.constant 0 : i32
    %c0_i32_1 = arith.constant 0 : i32
    return %c0_i32, %c0_i32_0 : i32, i32
  }
  func.func @transform_3(%arg0: i32, %arg1: i32) -> (i32, i32) {
    %c0_i32 = arith.constant 0 : i32
    %c0_i32_0 = arith.constant 0 : i32
    %c0_i32_1 = arith.constant 0 : i32
    return %c0_i32, %c0_i32_0 : i32, i32
  }
  func.func @transform_4(%arg0: i32, %arg1: i32) -> (i32, i32) {
    %c0_i32 = arith.constant 0 : i32
    %c0_i32_0 = arith.constant 0 : i32
    %c0_i32_1 = arith.constant 0 : i32
    return %c0_i32, %c0_i32_0 : i32, i32
  }
  func.func @transform_5(%arg0: i32, %arg1: i32) -> (i32, i32) {
    %c0_i32 = arith.constant 0 : i32
    %c0_i32_0 = arith.constant 0 : i32
    %c0_i32_1 = arith.constant 0 : i32
    return %c0_i32, %c0_i32_0 : i32, i32
  }
  func.func @transform_6(%arg0: i32, %arg1: i32) -> (i32, i32) {
    %c0_i32 = arith.constant 0 : i32
    %c0_i32_0 = arith.constant 0 : i32
    %c0_i32_1 = arith.constant 0 : i32
    return %c0_i32, %c0_i32_0 : i32, i32
  }
  func.func @transform_7(%arg0: i32, %arg1: i32) -> (i32, i32) {
    %c0_i32 = arith.constant 0 : i32
    %c0_i32_0 = arith.constant 0 : i32
    %c0_i32_1 = arith.constant 0 : i32
    return %c0_i32, %c0_i32_0 : i32, i32
  }
  func.func @transform_8(%arg0: i32, %arg1: i32) -> (i32, i32) {
    %c0_i32 = arith.constant 0 : i32
    %c0_i32_0 = arith.constant 0 : i32
    %c0_i32_1 = arith.constant 0 : i32
    return %c0_i32, %c0_i32_0 : i32, i32
  }
  func.func @transform_9(%arg0: i32, %arg1: i32) -> (i32, i32, i32) {
    %c0_i32 = arith.constant 0 : i32
    %c0_i32_0 = arith.constant 0 : i32
    return %arg0, %arg1, %c0_i32 : i32, i32, i32
  }
}

</mosaic_0001>

<bundles_post_ra>
// kernel: tpu_custom_call.1
= control target key start
LH: loop header
LB: loop body
LE: loop exit
PB: predicated region body
PF: predicated region fallthrough
CT: control target
= control target key end

     0   :  { %14 = vsyncpa [#allocation9], 0  ;;  %s2508_s0 = inlined_call_operand.vmem [shape: f32[2,16,32], index: 0, kind: input, shape index: {}]   ;;  %s2509_s1 = inlined_call_operand.hbm [shape: f32[4,32], index: 1, kind: input, shape index: {}]   ;;  %s2510_s2 = inlined_call_operand.vmem [shape: f32[1,32], index: 2, kind: input, shape index: {}]   ;;  %s2511_s3 = inlined_call_operand.vmem [shape: f32[32,8], index: 3, kind: input, shape index: {}]   ;;  %s2512_s4 = inlined_call_operand.hbm [shape: f32[8,32], index: 4, kind: input, shape index: {}]   ;;  %s2513_s5 = inlined_call_operand.vmem [shape: f32[1,32], index: 5, kind: input, shape index: {}]   ;;  %s2514_s6 = inlined_call_operand.vmem [shape: bf16[16,32], index: 6, kind: input, shape index: {}]   ;;  %s2515_s7 = inlined_call_operand.vmem [shape: f32[8,32], index: 7, kind: input, shape index: {}]   ;;  %s2516_s8 = inlined_call_operand.vmem [shape: bf16[32,32], index: 8, kind: input, shape index: {}]   ;;  %s2517_s9 = inlined_call_operand.hbm [shape: f32[2,16,32], index: 9, kind: output, shape index: {}]  }
   0x1   :  { %15 = vsyncpa [#allocation12], 0 }
   0x2   :  { %16 = vsyncpa [#allocation10], 0 }
   0x3   :  { %18 = vsyncpa [#allocation10 + $0x1], 0  ;;  %s1982_s30 = smov 0   ;;  %s1984_s10 = smov 0  }
   0x4   :  { %s1986_s11 = smov 0   ;;  %s1988_s12 = smov 0  }
   0x5   :  { %s1990_s13 = smov 0   ;;  %s1992_s14 = smov 0  }
   0x6 LB: > { %2524 = sst [smem:[#allocation17_spill]] %s1903_s13  ;;  %s1496_s15 = sadd.s32 4294967295, %s1907_s14   ;;  %s1907_s14 = sphi %s1992_s14, %s24_s14   ;;  %s1903_s13 = sphi %s1990_s13, %s2538_s13   ;;  %s1899_s12 = sphi %s1988_s12, %s2537_s12   ;;  %s1895_s11 = sphi %s1986_s11, %s2541_s11   ;;  %s1891_s10 = sphi %s1984_s10, %s2540_s10   ;;  %s1887_s30 = sphi %s1982_s30, %s2539_s30  }
   0x7   : > { %s1497_s16 = sadd.s32 4294967294, %s1907_s14   ;;  %s36_s17 = sadd.s32 1, %s1903_s13 }
   0x8   : > { %s241_s18 = sadd.s32 1, %s1895_s11  ;;  %p38_p0 = scmp.ge.s32.totalorder %s36_s17, 2 }
   0x9   : > { %p251_p1 = scmp.ne.s32.totalorder %s1895_s11, %s1891_s10  ;;  %p252_p2 = scmp.eq.s32.totalorder %s1496_s15, 1 }
   0xa   : > { %p257_p3 = scmp.ne.s32.totalorder %s1891_s10, %s1887_s30  ;;  %s2543_s17 = smov (%p38_p0, %s36_s17), 0 }
   0xb   : > { %2525 = sst [smem:[#allocation18_spill]] %s2543_s17  ;;  %p2022_p4 = por %p252_p2, %p251_p1 }
   0xc   : > { %p258_p5 = scmp.eq.s32.totalorder %s1497_s16, 1  ;;  %s236_s20 = ssub.s32 %s1903_s13, %s2543_s17 }
   0xd   : > { %s2526_s19 = scalar_select %p2022_p4, 1, 0 }
   0xe   : > { %p1498_p6 = scmp.ge.s32.totalorder %s1907_s14, 1  ;;  %p239_p7 = scmp.eq.s32.totalorder %s236_s20, 0 }
   0xf   : > { %p2029_p8 = por %p258_p5, %p257_p3  ;;  %p265_p9 = scmp.lt.s32.totalorder %s1907_s14, 3 }
  0x10   : > { %s2035_s22 = scalar_select %p239_p7, %s1895_s11, %s241_s18  }
  0x11   : > { %s2527_s21 = scalar_select %p2029_p8, 1, 0 }
  0x12   : > { %2528 = sst [smem:[#allocation19_spill]] %s2035_s22  ;;  %p2037_p10 = pnand %p1498_p6, %p265_p9 }
  0x13   : > { %p2041_p11 = scmp.eq.s32.totalorder %s1496_s15, 0  ;;  %s1909_s25 = smov [#allocation8]  }
  0x14   : > { %s2529_s23 = scalar_select %p2037_p10, 1, 0 }
  0x15   : > { %s2530_s24 = scalar_select %p2041_p11, 1, 0 }
  0x16   : > { %p1591_p12 = pneg %p2037_p10  ;;  %s278_s26 = sshll.u32 %s1909_s25, 4  ;;  %s279_s26 = int_to_ptr.vmem [resolvable:$true] %s278_s26 }
  0x17   : > { %s1910_s27 = smov [#allocation11]   ;;  %s1765_s18 = scalar_lea.hbm %s2509_s1, 64 }
  0x18   : > { %s295_s28 = sshll.u32 %s1910_s27, 4  ;;  %p2049_p13 = pnand %p2041_p11, %p1591_p12  ;;  %s2053_s28 = int_to_ptr.vmem [resolvable:$true] %s295_s28 }
  0x19   : > { %p1766_p0 = scmp.ne.s32.totalorder %s2509_s1, %s1765_s18  ;;  %p1772_p5 = scmp.lt.u32.totalorder %s1765_s18, %s2509_s1 }
  0x1a   : > { %p1767_p1 = pneg %p2049_p13 }
  0x1c   : > { %p1768_p2 = pnand %p1767_p1, %p1766_p0 }
  0x1e   : > { %p1769_p3 = pneg %p1768_p2 }
  0x20   : > { %p1774_p6 = pnand %p1772_p5, %p1769_p3 }
  0x22   : > { %1777 = shalt.err (!%p1774_p6)
}
  0x23   : > { %s1778_s13 = scalar_lea.vmem %s279_s26, 64  ;;  %p1786_p8 = scmp.lt.s32.totalorder %s279_s26, %s279_s26 }
  0x24   : > { %p1779_p7 = scmp.ne.s32.totalorder %s279_s26, %s1778_s13  ;;  %p1787_p4 = scmp.lt.s32.totalorder %s1778_s13, %s1778_s13 }
  0x26   : > { %p1781_p9 = pnand %p1779_p7, %p1767_p1  ;;  %p1788_p11 = por %p1787_p4, %p1786_p8 }
  0x28   : > { %p1782_p12 = pneg %p1781_p9 }
  0x2a   : > { %p1789_p10 = pnand %p1788_p11, %p1782_p12 }
  0x2c   : > { %1792 = shalt.err (!%p1789_p10)
}
  0x2d   : > { %1594 = dma.hbm_to_vmem [thread:$0]  (!%p2049_p13), %s2509_s1, 64, %s279_s26, [#allocation9]  }
  0x2e   : > { %s1793_s20 = scalar_lea.hbm %s2512_s4, 128 }
  0x2f   : > { %p1794_p0 = scmp.ne.s32.totalorder %s2512_s4, %s1793_s20  ;;  %p1800_p10 = scmp.lt.u32.totalorder %s1793_s20, %s2512_s4 }
  0x31   : > { %p1796_p4 = pnand %p1794_p0, %p1767_p1 }
  0x33   : > { %p1797_p8 = pneg %p1796_p4 }
  0x35   : > { %p1802_p11 = pnand %p1800_p10, %p1797_p8 }
  0x37   : > { %1805 = shalt.err (!%p1802_p11)
}
  0x38   : > { %s1806_s26 = scalar_lea.vmem %s2053_s28, 128  ;;  %p1814_p6 = scmp.lt.s32.totalorder %s2053_s28, %s2053_s28 }
  0x39   : > { %p1807_p2 = scmp.ne.s32.totalorder %s2053_s28, %s1806_s26  ;;  %p1815_p7 = scmp.lt.s32.totalorder %s1806_s26, %s1806_s26 }
  0x3b   : > { %p1809_p3 = pnand %p1807_p2, %p1767_p1  ;;  %p1816_p9 = por %p1815_p7, %p1814_p6 }
  0x3d   : > { %p1810_p5 = pneg %p1809_p3 }
  0x3f   : > { %p1817_p12 = pnand %p1816_p9, %p1810_p5 }
  0x41   : > { %1820 = shalt.err (!%p1817_p12)
}
  0x42   : > { %1597 = dma.hbm_to_vmem [thread:$0]  (!%p2049_p13), %s2512_s4, 128, %s2053_s28, [#allocation12]  }
  0x43   : > { %p2532_p0 = scmp.ne.s32.totalorder %s2529_s23, 0 }
  0x44   : > { %p2533_p4 = scmp.ne.s32.totalorder (!%p2532_p0), %s2530_s24, 0 }
  0x45   : > { %333 = sbr.rel (%p2532_p0) target bundleno = 1057 (0x421), region = 56 }
  0x4c   : > { %1874 = dma.done.wait (%p2533_p4), [#allocation9], 64  }
  0x4d   : > { %1876 = vsyncadd (%p2533_p4), [#allocation9], 4294967232 }
  0x4e   : > { %1878 = dma.done.wait (%p2533_p4), [#allocation12], 128  }
  0x4f   : > { %1880 = vsyncadd (%p2533_p4), [#allocation12], 4294967168  ;;  %p378_p1 = scmp.lt.s32.totalorder %s1899_s12, 1  ;;  %vm393_vm0 = vcmask 261120   ;;  %v410_v0 = vlaneseq  ;;  %v1911_v1 = vmov 0.0   ;;  %v503_v6 = vld [vmem:[%s2511_s3] sm:$0xff] }
  0x50   : > { %395 = vst.msk [vmem:[#allocation7] sm:$0xff] %vm393_vm0, %v1911_v1  ;;  %394 = vst.msk [vmem:[#allocation6] sm:$0xff] %vm393_vm0, %v1911_v1  ;;  %v504_v7 = vld [vmem:[%s2511_s3 + $0x8] sm:$0xff]  ;;  %v505_v8 = vld [vmem:[%s2511_s3 + $0x10] sm:$0xff]  ;;  %vm430_vm1 = vcmask 1046528   ;;  %vm452_vm2 = vcmask 1045504  }
  0x51   : > { %s379_s23 = scalar_select %p378_p1, %s1899_s12, 1  ;;  %v2118_v2 = vshrl.u32 %v410_v0, 7  ;;  %v1573_v10 = vpack.c.bf16 %v504_v7, %v503_v6  ;;  %v506_v11 = vld [vmem:[%s2511_s3 + $0x18] sm:$0xff]  ;;  %v1508_v16 = vld [vmem:[%s2510_s2] ss:$0 sm:$0xff]  ;;  %vm472_vm3 = vcmask 1044480  }
  0x52   : > { %v1577_v14 = vpack.c.bf16 %v506_v11, %v505_v8  ;;  %v409_v17 = vld [vmem:[#allocation8] sm:$0xf]  ;;  %v595_v21 = vld [vmem:[#allocation11] sm:$0xff]  ;;  %vm510_vm4 = vcmask 1042432   ;;  %vm738_vm5 = vsmask.f32 5376 }
  0x53   : > { %s1527_s28 = sshll.u32 %s379_s23, 4  ;;  %v2124_v3 = vsub.s32 0, %v2118_v2  ;;  %v2127_v4 = vsub.s32 1, %v2118_v2  ;;  %v2130_v5 = vsub.s32 2, %v2118_v2  ;;  %v2142_v9 = vsub.s32 3, %v2118_v2  ;;  %1574 = vmatprep.subr.bf16.mxu0 %v1573_v10  ;;  %1554 = vmatprep.subr.mxu1 %v595_v21  ;;  %s374_s26 = sand.u32 1, %s1891_s10  }
  0x54   : > { %s385_s24 = scalar_lea.vmem %s2508_s0, %s1527_s28  ;;  %1576 = vmatpush3.bf16.msra.mxu0 %v1573_v10  ;;  %1555 = vmatpush3.msra.mxu1 %v595_v21  ;;  %vm1912_vm6 = vmmov 0   ;;  %vm603_vm7 = vcmask 64512   ;;  %vm803_vm8 = vcmask 130048   ;;  %vm1296_vm13 = vcmask 1040384   ;;  %s1505_s22 = sshll.u32 %s374_s26, 4 }
  0x55   : > { %v396_v12 = vld [vmem:[%s385_s24] sm:$0xff]  ;;  %v397_v13 = vld [vmem:[%s385_s24 + $0x8] sm:$0xff]  ;;  %v413_v18 = vrot.slane %v409_v17, %v2124_v3  ;;  %v423_v19 = vrot.slane %v409_v17, %v2127_v4  ;;  %v445_v20 = vrot.slane %v409_v17, %v2130_v5  ;;  %v467_v22 = vrot.slane %v409_v17, %v2142_v9  ;;  %1578 = vmatprep.subr.bf16.mxu0 %v1577_v14  ;;  %s376_s17 = scalar_lea.vmem [#allocation13], %s1505_s22  ;;  %s1528_s28 = sshll.u32 %s1899_s12, 8 }
  0x56   : > { %1559 = vmatprep.subr.bf16.mxu1 %v1911_v1  ;;  %vm1298_vm14 = vcmask 1041408   ;;  %vm1301_vm15 = vcmask 1043456   ;;  %s1395_s23 = sshll.u32 %s376_s17, 4  ;;  %s2459_s24 = scalar_lea.hbm %s2517_s9, %s1528_s28  ;;  %s2453_s23 = int_to_ptr.vmem [resolvable:$true] %s1395_s23 }
  0x57   : > { %v398_v15 = vld [vmem:[#allocation7] sm:$0xff]  ;;  %v415_v24 = vmul.f32 %v413_v18, %v396_v12  ;;  %v425_v26 = vmul.f32 %v423_v19, %v396_v12  ;;  %v426_v27 = vmul.f32 %v423_v19, %v397_v13  ;;  %v447_v29 = vmul.f32 %v445_v20, %v396_v12  ;;  %s2462_s16 = scalar_lea.sflag [#allocation10], %s374_s26  ;;  %s1821_s12 = scalar_lea.vmem %s2453_s23, 256 }
  0x58   : > { %400 = vst.msk [vmem:[#allocation7] sm:$0xff] %vm393_vm0, %v397_v13  ;;  %v414_v23 = vmul.f32 %v413_v18, %v398_v15  ;;  %v424_v25 = vmul.f32 %v423_v19, %v398_v15  ;;  %v446_v28 = vmul.f32 %v445_v20, %v398_v15  ;;  %v448_v30 = vmul.f32 %v445_v20, %v397_v13  ;;  %p1822_p13 = scmp.ne.s32.totalorder %s2453_s23, %s1821_s12  ;;  %p2534_p8 = scmp.ne.s32.totalorder %s2526_s19, 0 }
  0x59   : > { %v418_v32 = vadd.f32 %v1508_v16, %v415_v24  ;;  %v432_v34 = vrot.slane %v425_v26, 1  ;;  %1580 = vmatpush3.bf16.msra.mxu0 %v1577_v14  ;;  %v434_v35 = vrot.slane %v426_v27, 1  ;;  %v454_v37 = vrot.slane %v447_v29, 2  ;;  %s1929_s18 = smov [#allocation13]  }
  0x5a   : > { %v417_v31 = vadd.f32 %v1508_v16, %v414_v23  ;;  %v431_v33 = vrot.slane %v424_v25, 1  ;;  %v453_v36 = vrot.slane %v446_v28, 2  ;;  %v456_v38 = vrot.slane %v448_v30, 2  ;;  %1565 = vmatprep.subr.bf16.mxu0 %v1911_v1  ;;  %p1823_p10 = pnand %p1822_p13, %p2534_p8  ;;  %s1825_s20 = sshll.u32 %s1929_s18, 4  ;;  %s1826_s20 = int_to_ptr.vmem [resolvable:$false] %s1825_s20 }
  0x5b   : > { %v468_v40 = vmul.f32 %v467_v22, %v396_v12  ;;  %v469_v41 = vmul.f32 %v467_v22, %v397_v13  ;;  %v416_v42 = vmul.f32 %v413_v18, %v397_v13  ;;  %v435_v43 = vsel %vm430_vm1, %v432_v34, %v434_v35  ;;  %s1827_s25 = scalar_lea.vmem %s1826_s20, 512  ;;  %p1828_p2 = scmp.lt.s32.totalorder %s2453_s23, %s1826_s20 }
  0x5c   : > { %v433_v39 = vsel %vm430_vm1, %v431_v33, %v432_v34  ;;  %v455_v45 = vsel %vm452_vm2, %v453_v36, %v454_v37  ;;  %v457_v46 = vsel %vm452_vm2, %v454_v37, %v456_v38  ;;  %v440_v47 = vadd.f32 %v435_v43, %v418_v32  ;;  %v1710_v37 = vld [vmem:[%s2514_s6] sm:$0xff]   ;;  %p1824_p11 = pneg %p1823_p10  ;;  %p1829_p3 = scmp.lt.s32.totalorder %s1827_s25, %s1821_s12 }
  0x5d   : > { %v439_v44 = vadd.f32 %v433_v39, %v417_v31  ;;  %v473_v48 = vrot.slane %v468_v40, 3  ;;  %v474_v49 = vrot.slane %v469_v41, 3  ;;  %v419_v50 = vadd.f32 %v1508_v16, %v416_v42  ;;  %v1514_v40 = vld [vmem:[%s2513_s5] ss:$0 sm:$0xff] }
  0x5e   : > { %v462_v52 = vadd.f32 %v457_v46, %v440_v47  ;;  %v1914_v39 = vmov 0   ;;  %p1830_p5 = por %p1829_p3, %p1828_p2 }
  0x5f   : > { %v461_v51 = vadd.f32 %v455_v45, %v439_v44  ;;  %v475_v53 = vsel %vm472_vm3, %v473_v48, %v474_v49  ;;  %v441_v54 = vadd.f32 %v434_v35, %v419_v50  ;;  %1677 = vset.pattern.permute.xlu0 %v1914_v39 }
  0x60   : > { %v480_v56 = vadd.f32 %v475_v53, %v462_v52  ;;  %p1831_p6 = pnand %p1830_p5, %p1824_p11 }
  0x61   : > { %v479_v55 = vadd.f32 %v473_v48, %v461_v51  ;;  %v463_v57 = vadd.f32 %v456_v38, %v441_v54  ;;  %v1913_v38 = vmov 2  }
  0x62   : > { %v1510_v59 = vmul.f32 -1.442695, %v480_v56  ;;  %1679 = vset.pattern.permute.xlu1 %v1913_v38 }
  0x63   : > { %v1509_v58 = vmul.f32 -1.442695, %v479_v55  ;;  %v481_v60 = vadd.f32 %v474_v49, %v463_v57 }
  0x65   : > { %1713 = vpow2.f32 %v1509_v58  ;;  %v1511_v61 = vmul.f32 -1.442695, %v481_v60 }
  0x66   : > { %1715 = vpow2.f32 %v1510_v59 }
  0x67   : > { %1717 = vpow2.f32 %v1511_v61  ;;  %v1916_v61 = vmov 1  }
  0x6f   : > { %v1714_v62 = vpop.eup %1713 }
  0x70   : > { %v1716_v63 = vpop.eup %1715  ;;  %v491_v0 = vadd.f32 1.0, %v1714_v62 }
  0x71   : > { %v492_v6 = vadd.f32 1.0, %v1716_v63  ;;  %v1718_v7 = vpop.eup %1717 }
  0x72   : > { %1719 = vrcp.f32 %v491_v0  ;;  %v493_v8 = vadd.f32 1.0, %v1718_v7  ;;  %v1917_v0 = vmov 4  }
  0x73   : > { %1721 = vrcp.f32 %v492_v6  ;;  %v1918_v6 = vmov 5  }
  0x74   : > { %1723 = vrcp.f32 %v493_v8 }
  0x7c   : > { %v1720_v10 = vpop.eup %1719 }
  0x7d   : > { %v1722_v11 = vpop.eup %1721  ;;  %v500_v12 = vmul.f32 %v1720_v10, %v479_v55 }
  0x7e   : > { %v501_v13 = vmul.f32 %v1722_v11, %v480_v56  ;;  %v1724_v14 = vpop.eup %1723 }
  0x7f   : > { %v511_v15 = vrot.slane %v500_v12, 5  ;;  %v502_v18 = vmul.f32 %v1724_v14, %v481_v60  ;;  %v1915_v60 = vmov 3  }
  0x80   : > { %v512_v16 = vrot.slane %v501_v13, 5  ;;  %v731_v17 = vpack.c.bf16 %v501_v13, %v500_v12  ;;  %v1919_v12 = vmov 6   ;;  %v1920_v13 = vmov 8  }
  0x81   : > { %v514_v20 = vrot.slane %v502_v18, 5  ;;  %v732_v22 = vpack.c.bf16 %v502_v18, %v502_v18 }
  0x82   : > { %v2163_v19 = vsel %vm510_vm4, %v511_v15, %v512_v16  ;;  %v740_v23 = vshrl.u32 %v731_v17, 16  ;;  %v743_v24 = vshll.u32 %v731_v17, 16 }
  0x83   : > { %1551 = vmatprep.mubr.msk.f32.mxu0 %vm393_vm0, %v2163_v19  ;;  %v2168_v21 = vsel %vm510_vm4, %v512_v16, %v514_v20  ;;  %v748_v25 = vshrl.u32 %v732_v22, 16  ;;  %v751_v26 = vshll.u32 %v732_v22, 16 }
  0x84   : > { %1552 = vmatmul.mubr.msk.f32.vlgmr.msra.gmra.mrb[0].mxu0 %vm393_vm0, %v2168_v21  ;;  %v742_v27 = vrot.slane %v740_v23, 2  ;;  %v745_v28 = vrot.slane %v743_v24, 3 }
  0x85   : > { %v750_v29 = vrot.slane %v748_v25, 2  ;;  %v753_v30 = vrot.slane %v751_v26, 3  ;;  %1569 = vmatprep.mubr.msk.bf16.mxu0 %vm1912_vm6, %v1911_v1 }
  0x86   : > { %v746_v31 = vor.u32 %v745_v28, %v742_v27  ;;  %v1921_v27 = vmov 7   ;;  %v1922_v28 = vmov 11  }
  0x87   : > { %v754_v32 = vor.u32 %v753_v30, %v750_v29 }
  0x89   : > { %v755_v33 = vsel %vm738_vm5, %v746_v31, %v754_v32 }
  0x8a   : > { %v760_v36 = vsel %vm393_vm0, %v755_v33, 0 }
 0x157   : > { %v1553_v34 = vpop.f32.mrb[0].mxu0 }
 0x158   : > { %v586_v35 = vpop.f32.mrb[1].mxu0 }
 0x159   : > { %1556 = vmatprep.mubr.msk.f32.mxu1 %vm603_vm7, %v586_v35  ;;  %v1924_v35 = vmov 14  }
 0x15a   : > { %1557 = vmatmul.mubr.msk.f32.vlgmr.msra.gmra.mrb[0].mxu1 %vm603_vm7, %v1553_v34  ;;  %v1923_v34 = vmov 9  }
 0x15b   : > { %1560 = vmatpush3.bf16.xpose.msra.mxu1 %v760_v36  ;;  %1561 = vmatprep.mubr.msk.bf16.mxu1 %vm1912_vm6, %v1911_v1  ;;  %v1925_v36 = vmov 10  }
 0x162   : > { %1562 = vmatmul.mubr.msk.bf16.vlgmr.msra.gmra.mrb[4].mxu1 %vm393_vm0, %v1710_v37  ;;  %v1927_v37 = vmov 12  }
 0x22d   : > { %v1558_v41 = vpop.f32.mrb[0].mxu1 }
 0x22e   : > { %v2184_v42 = vadd.f32 %v1558_v41, %v1514_v40  ;;  %v676_v43 = vpop.f32.mrb[1].mxu1  ;;  %v2243_v41 = vld [vmem:[%s2515_s7] sm:$0xff] }
 0x22f   : > { %v2186_v44 = vadd.f32 %v1514_v40, %v676_v43  ;;  %v1928_v40 = vmov 13  }
 0x230   : > { %v692_v45 = vand.u32 2147483647, %v2184_v42  ;;  %v686_v18 = vmax.f32 %v2184_v42, 0.0  ;;  %vm688_vm11 = vcmp.ne.f32.partialorder %v2184_v42, %v2184_v42 }
 0x231   : > { %v691_v46 = vand.u32 2147483647, %v2186_v44  ;;  %v685_v24 = vmax.f32 %v2186_v44, 0.0  ;;  %vm687_vm12 = vcmp.ne.f32.partialorder %v2186_v44, %v2186_v44 }
 0x232   : > { %v694_v47 = vsub.f32 0.0, %v692_v45 }
 0x233   : > { %v693_v48 = vsub.f32 0.0, %v691_v46 }
 0x234   : > { %v697_v49 = vmul.f32 1.442695, %v694_v47 }
 0x235   : > { %v695_v50 = vmul.f32 1.442695, %v693_v48  ;;  %v796_v51 = vpop.f32.mrb[4].mxu1 }
 0x236   : > { %1725 = vpow2.f32 %v697_v49  ;;  %804 = vst.msk [vmem:[#allocation4] sm:$0xff] %vm803_vm8, %v796_v51  ;;  %v1563_v52 = vpop.f32.mrb[5].mxu1  ;;  %v2253_v49 = vsub.s32 4, %v2118_v2  ;;  %v1711_v51 = vld [vmem:[%s2516_s8] sm:$0xff]  }
 0x237   : > { %1727 = vpow2.f32 %v695_v50  ;;  %v799_v53 = vpop.f32.mrb[6].mxu1  ;;  %1566 = vmatpush3.bf16.msra.mxu0 %v1711_v51  ;;  %v1712_v52 = vld [vmem:[%s2516_s8 + $0x8] sm:$0xff]  }
 0x238   : > { %805 = vst.msk [vmem:[#allocation4 + $0x8] sm:$0xff] %vm803_vm8, %v799_v53  ;;  %v1564_v54 = vpop.f32.mrb[7].mxu1  ;;  %v2264_v53 = vsub.s32 5, %v2118_v2  ;;  %1567 = vmatprep.subr.bf16.mxu0 %v1911_v1 }
 0x23b   : > { %1568 = vmatpush3.bf16.msra.mxu0 %v1712_v52 }
 0x23d   : > { %v2190_v55 = vld [vmem:[#allocation4] sm:$0xff] }
 0x23e   : > { %885 = vperm.xlu1 %1679, %v2190_v55   ;;  %824 = vperm.xlu0 %1677, %v2190_v55  }
 0x240   : > { %v1726_v56 = vpop.eup %1725 }
 0x241   : > { %v1728_v57 = vpop.eup %1727  ;;  %v708_v58 = vadd.f32 1.0, %v1726_v56  ;;  %v711_v62 = vmul.f32 -0.5, %v1726_v56  ;;  %v714_v8 = vand.u32 2147483647, %v1726_v56 }
 0x242   : > { %v699_v59 = vadd.f32 1.0, %v1728_v57  ;;  %1680 = vset.pattern.permute.xlu1 %v1915_v60  ;;  %1678 = vset.pattern.permute.xlu0 %v1916_v61  ;;  %v702_v63 = vmul.f32 -0.5, %v1728_v57  ;;  %v705_v11 = vand.u32 2147483647, %v1728_v57 }
 0x243   : > { %1729 = vlog2.f32 %v708_v58  ;;  %915 = vperm.xlu1 %1680, %v2190_v55   ;;  %855 = vperm.xlu0 %1678, %v2190_v55   ;;  %v712_v7 = vadd.f32 1.0, %v711_v62  ;;  %vm715_vm9 = vcmp.lt.f32.partialorder %v714_v8, 0.0004427343 }
 0x244   : > { %1731 = vlog2.f32 %v699_v59  ;;  %v703_v10 = vadd.f32 1.0, %v702_v63  ;;  %vm706_vm10 = vcmp.lt.f32.partialorder %v705_v11, 0.0004427343  ;;  %v807_v59 = vld [vmem:[#allocation6] sm:$0xff]  ;;  %v2283_v11 = vsub.s32 7, %v2118_v2 }
 0x245   : > { %v713_v17 = vmul.f32 %v1726_v56, %v712_v7 }
 0x246   : > { %v704_v22 = vmul.f32 %v1728_v57, %v703_v10 }
 0x247   : > { %1681 = vset.pattern.permute.xlu1 %v1917_v0  ;;  %1682 = vset.pattern.permute.xlu0 %v1918_v6 }
 0x248   : > { %945 = vperm.xlu1 %1681, %v2190_v55   ;;  %975 = vperm.xlu0 %1682, %v2190_v55  }
 0x24c   : > { %1683 = vset.pattern.permute.xlu1 %v1919_v12  ;;  %1685 = vset.pattern.permute.xlu0 %v1920_v13 }
 0x24d   : > { %v1730_v14 = vpop.eup %1729  ;;  %1005 = vperm.xlu1 %1683, %v2190_v55   ;;  %1065 = vperm.xlu0 %1685, %v2190_v55  }
 0x24e   : > { %v1732_v15 = vpop.eup %1731  ;;  %v710_v16 = vmul.f32 0.6931472, %v1730_v14 }
 0x24f   : > { %v701_v20 = vmul.f32 0.6931472, %v1732_v15 }
 0x250   : > { %v716_v23 = vsel %vm715_vm9, %v713_v17, %v710_v16 }
 0x251   : > { %v718_v25 = vadd.f32 %v716_v23, %v686_v18  ;;  %v707_v26 = vsel %vm706_vm10, %v704_v22, %v701_v20  ;;  %1684 = vset.pattern.permute.xlu1 %v1921_v27  ;;  %1688 = vset.pattern.permute.xlu0 %v1922_v28 }
 0x252   : > { %v717_v29 = vadd.f32 %v707_v26, %v685_v24  ;;  %1035 = vperm.xlu1 %1684, %v2190_v55   ;;  %1155 = vperm.xlu0 %1688, %v2190_v55  }
 0x253   : > { %v720_v30 = vsel %vm688_vm11, %v2184_v42, %v718_v25 }
 0x254   : > { %722 = vst.msk [vmem:[#allocation2 + $0x8] sm:$0xff] %vm393_vm0, %v720_v30  ;;  %v726_v31 = vmul.f32 %v720_v30, %v2168_v21  ;;  %v719_v32 = vsel %vm687_vm12, %v2186_v44, %v717_v29  ;;  %v1926_v21 = vmov 15  }
 0x255   : > { %721 = vst.msk [vmem:[#allocation2] sm:$0xff] %vm393_vm0, %v719_v32  ;;  %v725_v33 = vmul.f32 %v719_v32, %v2163_v19  ;;  %v813_v19 = vld [vmem:[#allocation4 + $0x8] sm:$0xff] }
 0x256   : > { %728 = vst.msk [vmem:[#allocation3 + $0x8] sm:$0xff] %vm393_vm0, %v726_v31  ;;  %1686 = vset.pattern.permute.xlu1 %v1923_v34  ;;  %1691 = vset.pattern.permute.xlu0 %v1924_v35 }
 0x257   : > { %727 = vst.msk [vmem:[#allocation3] sm:$0xff] %vm393_vm0, %v725_v33  ;;  %1095 = vperm.xlu1 %1686, %v2190_v55   ;;  %1245 = vperm.xlu0 %1691, %v2190_v55  }
 0x25b   : > { %1687 = vset.pattern.permute.xlu1 %v1925_v36  ;;  %1692 = vset.pattern.permute.xlu0 %v1926_v21 }
 0x25c   : > { %1125 = vperm.xlu1 %1687, %v2190_v55   ;;  %1275 = vperm.xlu0 %1692, %v2190_v55  }
 0x25e   : > { %v2270_v57 = vld [vmem:[#allocation3] sm:$0xff] }
 0x25f   : > { %v830_v1 = vrot.slane %v2270_v57, %v2124_v3  ;;  %v861_v16 = vrot.slane %v2270_v57, %v2127_v4  ;;  %v891_v25 = vrot.slane %v2270_v57, %v2130_v5 }
 0x260   : > { %1689 = vset.pattern.permute.xlu1 %v1927_v37  ;;  %1695 = vset.pattern.permute.xlu0 %v1920_v13 }
 0x261   : > { %1185 = vperm.xlu1 %1689, %v2190_v55   ;;  %1075 = vperm.xlu0 %1695, %v813_v19  }
 0x265   : > { %1690 = vset.pattern.permute.xlu1 %v1928_v40  ;;  %1698 = vset.pattern.permute.xlu0 %v1925_v36 }
 0x266   : > { %1215 = vperm.xlu1 %1690, %v2190_v55   ;;  %1135 = vperm.xlu0 %1698, %v813_v19  }
 0x26a   : > { %1693 = vset.pattern.permute.xlu1 %v1914_v39  ;;  %1703 = vset.pattern.permute.xlu0 %v1918_v6 }
 0x26b   : > { %985 = vperm.xlu0 %1703, %v813_v19   ;;  %835 = vperm.xlu1 %1693, %v813_v19  }
 0x26f   : > { %1706 = vset.pattern.permute.xlu0 %v1924_v35  ;;  %1694 = vset.pattern.permute.xlu1 %v1916_v61  ;;  %v2275_v61 = vsub.s32 6, %v2118_v2  ;;  %v921_v35 = vrot.slane %v2270_v57, %v2142_v9 }
 0x270   : > { %1255 = vperm.xlu0 %1706, %v813_v19   ;;  %865 = vperm.xlu1 %1694, %v813_v19  }
 0x274   : > { %1696 = vset.pattern.permute.xlu1 %v1923_v34  ;;  %1709 = vset.pattern.permute.xlu0 %v1926_v21 }
 0x275   : > { %1105 = vperm.xlu1 %1696, %v813_v19  }
 0x279   : > { %1697 = vset.pattern.permute.xlu1 %v1913_v38  ;;  %v2236_v38 = vld [vmem:[#allocation2] sm:$0xff] }
 0x27a   : > { %895 = vperm.xlu1 %1697, %v813_v19   ;;  %v817_v39 = vrot.slane %v2236_v38, %v2124_v3  ;;  %v849_v43 = vrot.slane %v2236_v38, %v2127_v4  ;;  %v879_v46 = vrot.slane %v2236_v38, %v2130_v5  ;;  %v909_v50 = vrot.slane %v2236_v38, %v2142_v9 }
 0x27b   : > { %v939_v56 = vrot.slane %v2236_v38, %v2253_v49  ;;  %v999_v10 = vrot.slane %v2236_v38, %v2275_v61  ;;  %v1029_v24 = vrot.slane %v2236_v38, %v2283_v11 }
 0x27c   : > { %v818_v42 = vmul.f32 %v817_v39, %v2243_v41  ;;  %v850_v45 = vmul.f32 %v849_v43, %v2243_v41  ;;  %v880_v48 = vmul.f32 %v879_v46, %v2243_v41  ;;  %v910_v55 = vmul.f32 %v909_v50, %v2243_v41 }
 0x27d   : > { %v940_v63 = vmul.f32 %v939_v56, %v2243_v41  ;;  %v1000_v2 = vmul.f32 %v999_v10, %v2243_v41  ;;  %v1030_v34 = vmul.f32 %v1029_v24, %v2243_v41 }
 0x27e   : > { %1699 = vset.pattern.permute.xlu1 %v1915_v60  ;;  %v819_v44 = vmul.f32 1.442695, %v818_v42  ;;  %v851_v47 = vmul.f32 1.442695, %v850_v45  ;;  %v881_v54 = vmul.f32 1.442695, %v880_v48  ;;  %v969_v60 = vrot.slane %v2236_v38, %v2264_v53 }
 0x27f   : > { %925 = vperm.xlu1 %1699, %v813_v19   ;;  %v911_v62 = vmul.f32 1.442695, %v910_v55  ;;  %v941_v13 = vmul.f32 1.442695, %v940_v63  ;;  %v1001_v32 = vmul.f32 1.442695, %v1000_v2  ;;  %v981_v55 = vrot.slane %v2270_v57, %v2264_v53 }
 0x280   : > { %1733 = vpow2.f32 %v819_v44  ;;  %v970_v14 = vmul.f32 %v969_v60, %v2243_v41  ;;  %v1031_v39 = vmul.f32 1.442695, %v1030_v34  ;;  %v951_v44 = vrot.slane %v2270_v57, %v2253_v49 }
 0x281   : > { %1735 = vpow2.f32 %v851_v47 }
 0x282   : > { %1737 = vpow2.f32 %v881_v54  ;;  %v971_v23 = vmul.f32 1.442695, %v970_v14 }
 0x283   : > { %1700 = vset.pattern.permute.xlu1 %v1922_v28  ;;  %1739 = vpow2.f32 %v911_v62 }
 0x284   : > { %1165 = vperm.xlu1 %1700, %v813_v19   ;;  %1741 = vpow2.f32 %v941_v13 }
 0x285   : > { %1743 = vpow2.f32 %v971_v23  ;;  %v2340_v23 = vld [vmem:[#allocation3 + $0x8] sm:$0xff] }
 0x286   : > { %1745 = vpow2.f32 %v1001_v32  ;;  %v1071_v32 = vrot.slane %v2340_v23, %v2124_v3 }
 0x287   : > { %1747 = vpow2.f32 %v1031_v39  ;;  %v1101_v39 = vrot.slane %v2340_v23, %v2127_v4 }
 0x288   : > { %1701 = vset.pattern.permute.xlu1 %v1917_v0 }
 0x289   : > { %955 = vperm.xlu1 %1701, %v813_v19  }
 0x28a   : > { %v1734_v58 = vpop.eup %1733 }
 0x28b   : > { %v821_v7 = vmul.f32 %v1734_v58, %v807_v59  ;;  %v1736_v15 = vpop.eup %1735 }
 0x28c   : > { %v1738_v28 = vpop.eup %1737 }
 0x28d   : > { %1702 = vset.pattern.permute.xlu1 %v1927_v37 }
 0x28e   : > { %1195 = vperm.xlu1 %1702, %v813_v19  }
 0x292   : > { %1704 = vset.pattern.permute.xlu1 %v1928_v40 }
 0x293   : > { %1225 = vperm.xlu1 %1704, %v813_v19  }
 0x297   : > { %1705 = vset.pattern.permute.xlu1 %v1919_v12 }
 0x298   : > { %1015 = vperm.xlu1 %1705, %v813_v19  }
 0x29c   : > { %1707 = vset.pattern.permute.xlu1 %v1921_v27  ;;  %v2298_v27 = vld [vmem:[#allocation2 + $0x8] sm:$0xff] }
 0x29d   : > { %1045 = vperm.xlu1 %1707, %v813_v19   ;;  %v1059_v33 = vrot.slane %v2298_v27, %v2124_v3  ;;  %v1089_v42 = vrot.slane %v2298_v27, %v2127_v4  ;;  %v1119_v52 = vrot.slane %v2298_v27, %v2130_v5 }
 0x29f   : > { %v1060_v38 = vmul.f32 %v1059_v33, %v2243_v41  ;;  %v1090_v51 = vmul.f32 %v1089_v42, %v2243_v41  ;;  %v1120_v63 = vmul.f32 %v1119_v52, %v2243_v41 }
 0x2a1   : > { %1708 = vset.pattern.permute.xlu1 %v1926_v21  ;;  %v1740_v21 = vpop.eup %1739  ;;  %v1061_v50 = vmul.f32 1.442695, %v1060_v38  ;;  %v1091_v62 = vmul.f32 1.442695, %v1090_v51  ;;  %v1239_v38 = vrot.slane %v2298_v27, %v2275_v61  ;;  %v1131_v51 = vrot.slane %v2340_v23, %v2130_v5 }
 0x2a2   : > { %1285 = vperm.xlu1 %1708, %v813_v19   ;;  %v1742_v45 = vpop.eup %1741 }
 0x2a3   : > { %v1744_v58 = vpop.eup %1743  ;;  %1749 = vpow2.f32 %v1061_v50 }
 0x2a4   : > { %1751 = vpow2.f32 %v1091_v62 }
 0x2bd   : > { %v886_v0 = vpop.permute.xlu1 %885  ;;  %v825_v6 = vpop.permute.xlu0 %824 }
 0x2be   : > { %v831_v8 = vmul.f32 %v830_v1, %v825_v6  ;;  %v892_v29 = vmul.f32 %v891_v25, %v886_v0  ;;  %v1149_v0 = vrot.slane %v2298_v27, %v2142_v9 }
 0x2c0   : > { %v2285_v12 = vadd.f32 %v831_v8, %v821_v7  ;;  %v1011_v7 = vrot.slane %v2270_v57, %v2275_v61  ;;  %v1746_v8 = vpop.eup %1745 }
 0x2c2   : > { %v916_v17 = vpop.permute.xlu1 %915  ;;  %v856_v18 = vpop.permute.xlu0 %855  ;;  %v853_v20 = vmul.f32 %v1736_v15, %v2285_v12  ;;  %v1121_v15 = vmul.f32 1.442695, %v1120_v63 }
 0x2c3   : > { %v862_v22 = vmul.f32 %v861_v16, %v856_v18  ;;  %v922_v19 = vmul.f32 %v921_v35, %v916_v17  ;;  %v1150_v16 = vmul.f32 %v1149_v0, %v2243_v41  ;;  %v1179_v17 = vrot.slane %v2298_v27, %v2253_v49 }
 0x2c4   : > { %1753 = vpow2.f32 %v1121_v15 }
 0x2c5   : > { %v2296_v26 = vadd.f32 %v862_v22, %v853_v20  ;;  %v1041_v20 = vrot.slane %v2270_v57, %v2283_v11  ;;  %v1748_v22 = vpop.eup %1747 }
 0x2c6   : > { %v1750_v57 = vpop.eup %1749 }
 0x2c7   : > { %v883_v30 = vmul.f32 %v1738_v28, %v2296_v26  ;;  %v946_v31 = vpop.permute.xlu1 %945  ;;  %v976_v46 = vpop.permute.xlu0 %975 }
 0x2c8   : > { %v952_v48 = vmul.f32 %v951_v44, %v946_v31  ;;  %v982_v60 = vmul.f32 %v981_v55, %v976_v46  ;;  %v1209_v31 = vrot.slane %v2298_v27, %v2264_v53  ;;  %v1752_v3 = vpop.eup %1751 }
 0x2c9   : > { %v2306_v36 = vadd.f32 %v892_v29, %v883_v30  ;;  %v1151_v29 = vmul.f32 1.442695, %v1150_v16  ;;  %v1180_v30 = vmul.f32 %v1179_v17, %v2243_v41 }
 0x2cb   : > { %v913_v37 = vmul.f32 %v1740_v21, %v2306_v36  ;;  %1755 = vpow2.f32 %v1151_v29 }
 0x2cc   : > { %v1006_v40 = vpop.permute.xlu1 %1005  ;;  %v1066_v1 = vpop.permute.xlu0 %1065 }
 0x2cd   : > { %v2312_v43 = vadd.f32 %v922_v19, %v913_v37  ;;  %v1012_v14 = vmul.f32 %v1011_v7, %v1006_v40  ;;  %v1072_v34 = vmul.f32 %v1071_v32, %v1066_v1  ;;  %v1181_v19 = vmul.f32 1.442695, %v1180_v30 }
 0x2ce   : > { %v1210_v40 = vmul.f32 %v1209_v31, %v2243_v41  ;;  %v1754_v4 = vpop.eup %1753  ;;  %v1161_v1 = vrot.slane %v2340_v23, %v2142_v9 }
 0x2cf   : > { %v943_v47 = vmul.f32 %v1742_v45, %v2312_v43  ;;  %1757 = vpow2.f32 %v1181_v19 }
 0x2d0   : > { %v1211_v46 = vmul.f32 1.442695, %v1210_v40 }
 0x2d1   : > { %v2320_v54 = vadd.f32 %v952_v48, %v943_v47  ;;  %v1036_v56 = vpop.permute.xlu1 %1035  ;;  %v1156_v2 = vpop.permute.xlu0 %1155  ;;  %v1240_v47 = vmul.f32 %v1239_v38, %v2243_v41  ;;  %v1269_v48 = vrot.slane %v2298_v27, %v2283_v11 }
 0x2d2   : > { %v1042_v25 = vmul.f32 %v1041_v20, %v1036_v56  ;;  %1759 = vpow2.f32 %v1211_v46  ;;  %v1162_v0 = vmul.f32 %v1161_v1, %v1156_v2  ;;  %v1221_v2 = vrot.slane %v2340_v23, %v2264_v53 }
 0x2d3   : > { %v973_v59 = vmul.f32 %v1744_v58, %v2320_v54 }
 0x2d5   : > { %v2328_v6 = vadd.f32 %v982_v60, %v973_v59  ;;  %v1241_v59 = vmul.f32 1.442695, %v1240_v47  ;;  %v1270_v60 = vmul.f32 %v1269_v48, %v2243_v41  ;;  %v1756_v27 = vpop.eup %1755 }
 0x2d6   : > { %v1096_v10 = vpop.permute.xlu1 %1095  ;;  %v1246_v21 = vpop.permute.xlu0 %1245 }
 0x2d7   : > { %v1003_v13 = vmul.f32 %v1746_v8, %v2328_v6  ;;  %v1102_v45 = vmul.f32 %v1101_v39, %v1096_v10  ;;  %1761 = vpow2.f32 %v1241_v59  ;;  %v1271_v10 = vmul.f32 1.442695, %v1270_v60 }
 0x2d9   : > { %v2336_v18 = vadd.f32 %v1012_v14, %v1003_v13  ;;  %v1191_v13 = vrot.slane %v2340_v23, %v2253_v49  ;;  %v1758_v14 = vpop.eup %1757  ;;  %1763 = vpow2.f32 %v1271_v10 }
 0x2db   : > { %v1033_v24 = vmul.f32 %v1748_v22, %v2336_v18  ;;  %v1126_v28 = vpop.permute.xlu1 %1125  ;;  %v1276_v55 = vpop.permute.xlu0 %1275 }
 0x2dc   : > { %v1132_v58 = vmul.f32 %v1131_v51, %v1126_v28  ;;  %v1760_v49 = vpop.eup %1759 }
 0x2dd   : > { %v2348_v33 = vadd.f32 %v1042_v25, %v1033_v24 }
 0x2df   : > { %v1063_v35 = vmul.f32 %v1750_v57, %v2348_v33 }
 0x2e0   : > { %v1186_v37 = vpop.permute.xlu1 %1185  ;;  %v2374_v8 = vpop.permute.xlu0 %1075 }
 0x2e1   : > { %v2356_v42 = vadd.f32 %v1072_v34, %v1063_v35  ;;  %v1192_v17 = vmul.f32 %v1191_v13, %v1186_v37  ;;  %v1251_v34 = vrot.slane %v2340_v23, %v2275_v61  ;;  %v1762_v19 = vpop.eup %1761 }
 0x2e3   : > { %v1093_v44 = vmul.f32 %v1752_v3, %v2356_v42  ;;  %v1281_v3 = vrot.slane %v2340_v23, %v2283_v11  ;;  %v1764_v46 = vpop.eup %1763 }
 0x2e5   : > { %v2362_v50 = vadd.f32 %v1102_v45, %v1093_v44  ;;  %v1216_v52 = vpop.permute.xlu1 %1215  ;;  %v2387_v25 = vpop.permute.xlu0 %1135  ;;  %v1282_v51 = vmul.f32 %v1281_v3, %v1276_v55 }
 0x2e6   : > { %v1222_v30 = vmul.f32 %v1221_v2, %v1216_v52 }
 0x2e7   : > { %v1123_v56 = vmul.f32 %v1754_v4, %v2362_v50 }
 0x2e9   : > { %v2370_v62 = vadd.f32 %v1132_v58, %v1123_v56 }
 0x2ea   : > { %v836_v63 = vpop.permute.xlu1 %835  ;;  %v986_v38 = vpop.permute.xlu0 %985 }
 0x2eb   : > { %v1153_v5 = vmul.f32 %v1756_v27, %v2370_v62  ;;  %v838_v7 = vmul.f32 %v836_v63, %v2285_v12  ;;  %v988_v52 = vmul.f32 %v986_v38, %v2328_v6 }
 0x2ed   : > { %v2378_v41 = vadd.f32 %v1162_v0, %v1153_v5  ;;  %v839_v9 = vsel %vm393_vm0, %v838_v7, 0.0  ;;  %v989_v1 = vsel %vm393_vm0, %v988_v52, 0.0 }
 0x2ee   : > { %v840_v15 = vrot.slane %v839_v9, 4  ;;  %v990_v0 = vrot.slane %v989_v1, 4 }
 0x2ef   : > { %v1183_v16 = vmul.f32 %v1758_v14, %v2378_v41  ;;  %v866_v20 = vpop.permute.xlu1 %865 }
 0x2f0   : > { %v841_v22 = vadd.f32 %v840_v15, %v839_v9  ;;  %v868_v24 = vmul.f32 %v866_v20, %v2296_v26  ;;  %v1252_v26 = vmul.f32 %v1251_v34, %v1246_v21  ;;  %v991_v14 = vadd.f32 %v990_v0, %v989_v1 }
 0x2f1   : > { %v2382_v12 = vadd.f32 %v1192_v17, %v1183_v16  ;;  %v1138_v34 = vmul.f32 %v2387_v25, %v2370_v62 }
 0x2f2   : > { %v842_v28 = vrot.slane %v841_v22, 2  ;;  %v869_v31 = vsel %vm393_vm0, %v868_v24, 0.0 }
 0x2f3   : > { %v1213_v29 = vmul.f32 %v1760_v49, %v2382_v12  ;;  %v870_v32 = vrot.slane %v869_v31, 4  ;;  %v992_v49 = vrot.slane %v991_v14, 2 }
 0x2f4   : > { %v1106_v57 = vpop.permute.xlu1 %1105  ;;  %v843_v53 = vadd.f32 %v842_v28, %v841_v22  ;;  %v1078_v22 = vmul.f32 %v2374_v8, %v2356_v42 }
 0x2f5   : > { %v2393_v35 = vadd.f32 %v1222_v30, %v1213_v29  ;;  %v871_v37 = vadd.f32 %v870_v32, %v869_v31  ;;  %v1108_v17 = vmul.f32 %v1106_v57, %v2362_v50  ;;  %v993_v8 = vadd.f32 %v992_v49, %v991_v14 }
 0x2f6   : > { %v844_v47 = vrot.slane %v843_v53, 1  ;;  %v1079_v57 = vsel %vm393_vm0, %v1078_v22, 0.0 }
 0x2f7   : > { %v1243_v40 = vmul.f32 %v1762_v19, %v2393_v35  ;;  %v872_v39 = vrot.slane %v871_v37, 2  ;;  %v1109_v30 = vsel %vm393_vm0, %v1108_v17, 0.0  ;;  %v1080_v38 = vrot.slane %v1079_v57, 4 }
 0x2f8   : > { %v845_v11 = vadd.f32 %v844_v47, %v843_v53  ;;  %v994_v3 = vrot.slane %v993_v8, 1 }
 0x2f9   : > { %v2398_v44 = vadd.f32 %v1252_v26, %v1243_v40  ;;  %v896_v45 = vpop.permute.xlu1 %895  ;;  %v873_v48 = vadd.f32 %v872_v39, %v871_v37  ;;  %v1110_v37 = vrot.slane %v1109_v30, 4 }
 0x2fa   : > { %v898_v61 = vmul.f32 %v896_v45, %v2306_v36  ;;  %v1256_v45 = vpop.permute.xlu0 %1255 }
 0x2fb   : > { %v1273_v21 = vmul.f32 %v1764_v46, %v2398_v44  ;;  %v874_v4 = vrot.slane %v873_v48, 1  ;;  %v1258_v25 = vmul.f32 %v1256_v45, %v2398_v44  ;;  %v1111_v47 = vadd.f32 %v1110_v37, %v1109_v30 }
 0x2fc   : > { %v899_v56 = vsel %vm393_vm0, %v898_v61, 0.0 }
 0x2fd   : > { %v900_v58 = vrot.slane %v899_v56, 4  ;;  %v2404_v59 = vadd.f32 %v1282_v51, %v1273_v21  ;;  %v875_v23 = vadd.f32 %v874_v4, %v873_v48  ;;  %v1081_v21 = vadd.f32 %v1080_v38, %v1079_v57 }
 0x2fe   : > { %v926_v60 = vpop.permute.xlu1 %925 }
 0x2ff   : > { %v901_v27 = vadd.f32 %v900_v58, %v899_v56  ;;  %v928_v36 = vmul.f32 %v926_v60, %v2312_v43  ;;  %1315 = vst.msk [vmem:[#allocation6] sm:$0xff] %vm393_vm0, %v2404_v59  ;;  %v1297_v6 = vsel %vm1296_vm13, %v845_v11, %v875_v23  ;;  %v995_v11 = vadd.f32 %v994_v3, %v993_v8 }
 0x300   : > { %v1259_v23 = vsel %vm393_vm0, %v1258_v25, 0.0  ;;  %v1112_v60 = vrot.slane %v1111_v47, 2 }
 0x301   : > { %v902_v55 = vrot.slane %v901_v27, 2  ;;  %v929_v63 = vsel %vm393_vm0, %v928_v36, 0.0 }
 0x302   : > { %v930_v5 = vrot.slane %v929_v63, 4 }
 0x303   : > { %v903_v7 = vadd.f32 %v902_v55, %v901_v27  ;;  %v1166_v10 = vpop.permute.xlu1 %1165  ;;  %v1082_v55 = vrot.slane %v1081_v21, 2 }
 0x304   : > { %v931_v13 = vadd.f32 %v930_v5, %v929_v63  ;;  %v1168_v32 = vmul.f32 %v1166_v10, %v2378_v41  ;;  %v1139_v41 = vsel %vm393_vm0, %v1138_v34, 0.0  ;;  %v1260_v5 = vrot.slane %v1259_v23, 4 }
 0x305   : > { %v904_v9 = vrot.slane %v903_v7, 1  ;;  %v1113_v10 = vadd.f32 %v1112_v60, %v1111_v47  ;;  %v1083_v17 = vadd.f32 %v1082_v55, %v1081_v21 }
 0x306   : > { %v932_v15 = vrot.slane %v931_v13, 2  ;;  %v1169_v26 = vsel %vm393_vm0, %v1168_v32, 0.0 }
 0x307   : > { %v905_v16 = vadd.f32 %v904_v9, %v903_v7  ;;  %v1170_v48 = vrot.slane %v1169_v26, 4  ;;  %v1084_v32 = vrot.slane %v1083_v17, 1 }
 0x308   : > { %v933_v43 = vadd.f32 %v932_v15, %v931_v13  ;;  %v956_v20 = vpop.permute.xlu1 %955 }
 0x309   : > { %v1299_v2 = vsel %vm1298_vm14, %v1297_v6, %v905_v16  ;;  %v958_v24 = vmul.f32 %v956_v20, %v2320_v54  ;;  %v1171_v1 = vadd.f32 %v1170_v48, %v1169_v26 }
 0x30a   : > { %v934_v28 = vrot.slane %v933_v43, 1 }
 0x30b   : > { %v959_v29 = vsel %vm393_vm0, %v958_v24, 0.0  ;;  %v1172_v13 = vrot.slane %v1171_v1, 2 }
 0x30c   : > { %v935_v31 = vadd.f32 %v934_v28, %v933_v43  ;;  %v960_v50 = vrot.slane %v959_v29, 4 }
 0x30d   : > { %v1196_v42 = vpop.permute.xlu1 %1195  ;;  %v1173_v24 = vadd.f32 %v1172_v13, %v1171_v1 }
 0x30e   : > { %v1300_v19 = vsel %vm510_vm4, %v1299_v2, %v935_v31  ;;  %v961_v54 = vadd.f32 %v960_v50, %v959_v29  ;;  %v1198_v53 = vmul.f32 %v1196_v42, %v2382_v12  ;;  %v1140_v12 = vrot.slane %v1139_v41, 4 }
 0x30f   : > { %v1261_v2 = vadd.f32 %v1260_v5, %v1259_v23 }
 0x310   : > { %v962_v40 = vrot.slane %v961_v54, 2  ;;  %v1199_v39 = vsel %vm393_vm0, %v1198_v53, 0.0  ;;  %v1141_v44 = vadd.f32 %v1140_v12, %v1139_v41  ;;  %v1174_v53 = vrot.slane %v1173_v24, 1 }
 0x311   : > { %v1200_v52 = vrot.slane %v1199_v39, 4  ;;  %v1262_v42 = vrot.slane %v1261_v2, 2  ;;  %v1085_v41 = vadd.f32 %v1084_v32, %v1083_v17 }
 0x312   : > { %v963_v46 = vadd.f32 %v962_v40, %v961_v54  ;;  %v1226_v62 = vpop.permute.xlu1 %1225  ;;  %v1142_v14 = vrot.slane %v1141_v44, 2  ;;  %v1175_v47 = vadd.f32 %v1174_v53, %v1173_v24 }
 0x313   : > { %v1228_v61 = vmul.f32 %v1226_v62, %v2393_v35  ;;  %v1201_v6 = vadd.f32 %v1200_v52, %v1199_v39 }
 0x314   : > { %v964_v51 = vrot.slane %v963_v46, 1  ;;  %v1143_v29 = vadd.f32 %v1142_v14, %v1141_v44 }
 0x315   : > { %v1229_v4 = vsel %vm393_vm0, %v1228_v61, 0.0  ;;  %v1202_v15 = vrot.slane %v1201_v6, 2 }
 0x316   : > { %v965_v56 = vadd.f32 %v964_v51, %v963_v46  ;;  %v1230_v58 = vrot.slane %v1229_v4, 4  ;;  %v1144_v37 = vrot.slane %v1143_v29, 1  ;;  %v1263_v46 = vadd.f32 %v1262_v42, %v1261_v2 }
 0x317   : > { %v1016_v27 = vpop.permute.xlu1 %1015  ;;  %v1203_v30 = vadd.f32 %v1202_v15, %v1201_v6 }
 0x318   : > { %v1302_v36 = vsel %vm1301_vm15, %v1300_v19, %v965_v56  ;;  %v1018_v35 = vmul.f32 %v1016_v27, %v2336_v18  ;;  %v1231_v63 = vadd.f32 %v1230_v58, %v1229_v4  ;;  %v1114_v18 = vrot.slane %v1113_v10, 1 }
 0x319   : > { %v1303_v0 = vsel %vm472_vm3, %v1302_v36, %v995_v11  ;;  %v1204_v26 = vrot.slane %v1203_v30, 1  ;;  %v1145_v61 = vadd.f32 %v1144_v37, %v1143_v29  ;;  %v1264_v4 = vrot.slane %v1263_v46, 1 }
 0x31a   : > { %v1019_v7 = vsel %vm393_vm0, %v1018_v35, 0.0  ;;  %v1232_v43 = vrot.slane %v1231_v63, 2  ;;  %v1115_v54 = vadd.f32 %v1114_v18, %v1113_v10 }
 0x31b   : > { %v1020_v9 = vrot.slane %v1019_v7, 4  ;;  %v1205_v12 = vadd.f32 %v1204_v26, %v1203_v30  ;;  %v1265_v36 = vadd.f32 %v1264_v4, %v1263_v46 }
 0x31c   : > { %v1046_v16 = vpop.permute.xlu1 %1045  ;;  %v1233_v50 = vadd.f32 %v1232_v43, %v1231_v63  ;;  %v1306_v25 = vsel %vm1296_vm13, %v1085_v41, %v1115_v54 }
 0x31d   : > { %v1021_v20 = vadd.f32 %v1020_v9, %v1019_v7  ;;  %v1048_v22 = vmul.f32 %v1046_v16, %v2348_v33  ;;  %v1307_v56 = vsel %vm1298_vm14, %v1306_v25, %v1145_v61 }
 0x31e   : > { %v1234_v39 = vrot.slane %v1233_v50, 1  ;;  %v1308_v11 = vsel %vm510_vm4, %v1307_v56, %v1175_v47 }
 0x31f   : > { %v1022_v49 = vrot.slane %v1021_v20, 2  ;;  %v1049_v28 = vsel %vm393_vm0, %v1048_v22, 0.0  ;;  %v1309_v60 = vsel %vm1301_vm15, %v1308_v11, %v1205_v12 }
 0x320   : > { %v1050_v31 = vrot.slane %v1049_v28, 4  ;;  %v1235_v52 = vadd.f32 %v1234_v39, %v1233_v50 }
 0x321   : > { %v1023_v57 = vadd.f32 %v1022_v49, %v1021_v20  ;;  %v1286_v34 = vpop.permute.xlu1 %1285 }
 0x322   : > { %v1051_v8 = vadd.f32 %v1050_v31, %v1049_v28  ;;  %v1288_v19 = vmul.f32 %v1286_v34, %v2404_v59  ;;  %v1310_v27 = vsel %vm472_vm3, %v1309_v60, %v1235_v52 }
 0x323   : > { %v1024_v33 = vrot.slane %v1023_v57, 1  ;;  %v1311_v35 = vsel %vm452_vm2, %v1310_v27, %v1265_v36 }
 0x324   : > { %v1052_v40 = vrot.slane %v1051_v8, 2  ;;  %v1289_v38 = vsel %vm393_vm0, %v1288_v19, 0.0 }
 0x325   : > { %v1025_v3 = vadd.f32 %v1024_v33, %v1023_v57  ;;  %v1290_v45 = vrot.slane %v1289_v38, 4 }
 0x326   : > { %v1053_v62 = vadd.f32 %v1052_v40, %v1051_v8 }
 0x327   : > { %v1304_v48 = vsel %vm452_vm2, %v1303_v0, %v1025_v3  ;;  %v1291_v59 = vadd.f32 %v1290_v45, %v1289_v38 }
 0x328   : > { %v1054_v51 = vrot.slane %v1053_v62, 1 }
 0x329   : > { %v1292_v21 = vrot.slane %v1291_v59, 2 }
 0x32a   : > { %v1055_v58 = vadd.f32 %v1054_v51, %v1053_v62 }
 0x32b   : > { %v1293_v23 = vadd.f32 %v1292_v21, %v1291_v59 }
 0x32c   : > { %v1305_v1 = vsel %vm430_vm1, %v1304_v48, %v1055_v58 }
 0x32d   : > { %v1294_v44 = vrot.slane %v1293_v23, 1 }
 0x32f   : > { %v1295_v6 = vadd.f32 %v1294_v44, %v1293_v23 }
 0x331   : > { %v1312_v55 = vsel %vm430_vm1, %v1311_v35, %v1295_v6 }
 0x332   : > { %v1313_v63 = vpack.c.bf16 %v1312_v55, %v1305_v1 }
 0x334   : > { %1314 = vst.msk [vmem:[#allocation5] sm:$0xff] %vm393_vm0, %v1313_v63 }
 0x33b   : > { %v1316_v0 = vld [vmem:[#allocation5] sm:$0xff] }
 0x33c   : > { %1570 = vmatmul.mubr.msk.bf16.vlgmr.msra.gmra.mrb[4].mxu0 %vm393_vm0, %v1316_v0 }
 0x40f   : > { %v1370_v5 = vpop.f32.mrb[4].mxu0 }
 0x410   : > { %1377 = vst.msk [vmem:[%s376_s17] sm:$0xff] %vm393_vm0, %v1370_v5  ;;  %v1571_v7 = vpop.f32.mrb[5].mxu0 }
 0x411   : > { %v1373_v10 = vpop.f32.mrb[6].mxu0 }
 0x412   : > { %1378 = vst.msk [vmem:[%s376_s17 + $0x8] sm:$0xff] %vm393_vm0, %v1373_v10  ;;  %v1572_v13 = vpop.f32.mrb[7].mxu0 }
 0x413   : > { %1834 = shalt.err (!%p1831_p6)
}
 0x414   : > { %s1835_s27 = scalar_lea.hbm %s2459_s24, 256  ;;  %s1839_s22 = scalar_lea.hbm %s2517_s9, 512 }
 0x415   : > { %p1836_p7 = scmp.ne.s32.totalorder %s2459_s24, %s1835_s27  ;;  %p1840_p0 = scmp.lt.u32.totalorder %s2459_s24, %s2517_s9 }
 0x416   : > { %p1841_p4 = scmp.lt.u32.totalorder %s1839_s22, %s1835_s27  ;;  %p1843_p13 = scmp.lt.u32.totalorder %s1835_s27, %s2459_s24 }
 0x417   : > { %p1837_p9 = pnand %p1836_p7, %p2534_p8 }
 0x418   : > { %p1842_p1 = por %p1841_p4, %p1840_p0 }
 0x419   : > { %p1838_p12 = pneg %p1837_p9 }
 0x41a   : > { %p1844_p10 = por %p1843_p13, %p1842_p1 }
 0x41c   : > { %p1845_p11 = pnand %p1844_p10, %p1838_p12 }
 0x41e   : > { %1848 = shalt.err (!%p1845_p11)
}
 0x41f   : > { %s1930_s29 = smov 128   ;;  %s1931_s15 = smov 8  }
 0x420   : > { %1589 = dma.vmem_to_hbm [thread:$0]  (%p2534_p8), %s2453_s23, 256, %s2459_s24, %s2462_s16, %s1930_s29, %s1930_s29, %s1931_s15  }
 0x421 PF: > { %p1606_p2 = scmp.ge.s32.totalorder %s1907_s14, 2  ;;  %s1410_s12 = sand.u32 1, %s1887_s30  }
 0x422   : > { %p2535_p3 = scmp.ne.s32.totalorder %s2527_s21, 0  ;;  %s1411_s18 = scalar_lea.sflag [#allocation10], %s1410_s12 }
 0x424   : > { %p1599_p5 = pnand %p1606_p2, %p2535_p3 }
 0x426   : > { %1882 = dma.done.wait (!%p1599_p5), %s1411_s18, 256  }
 0x427   : > { %1884 = vsyncadd (!%p1599_p5), %s1411_s18, 4294967040  ;;  %s24_s14 = sadd.s32 1, %s1907_s14   ;;  %s2536_s20 = sld [smem:[#allocation19_spill]] }
 0x428   : > { %p21_p6 = scmp.ge.s32.totalorder %s24_s14, 4   ;;  %s2537_s12 = sld [smem:[#allocation17_spill]] }
 0x429   : > { %s2538_s13 = sld [smem:[#allocation18_spill]]  ;;  %s2539_s30 = smov %s1891_s10 }
 0x42a   : > { %s2540_s10 = smov %s1895_s11  ;;  %23 = sbr.rel (!%p21_p6) target bundleno = 6 (0x6), region = 104 }
 0x42d   : > { %s2541_s11 = smov %s2536_s20 }
 0x431   :  { %1416 = vsyncpa [#allocation9], 1 }
 0x432   :  { %1418 = vsyncpa [#allocation9 + $0x1], 1 }
 0x433   :  { %1419 = vsyncpa [#allocation12], 1 }
 0x434   :  { %1420 = vsyncpa [#allocation10], 1 }
 0x435   :  { %1422 = vsyncpa [#allocation10 + $0x1], 1 }

</bundles_post_ra>
